<compile_context>
chip_gen: v7x
topology: tpu7x:2x2x1
jax: 0.10.0
libtpu: 0.0.40
codegen_flags: <defaults>
</compile_context>

<pallas_src>
import functools

import jax
import jax.numpy as jnp
from jax.experimental import pallas as pl
from jax.experimental.pallas import tpu as pltpu

LANE = 128


def _round_up(x, m):
    return (x + m - 1) // m * m


def _conv_bn_lrelu_kernel(x_ref, xh_ref, w_ref, bias_ref, o_ref, *,
                          stride, neg_slope, halo_rows):
    # x_ref:    (1, TS, Wp, Cinp)      main input rows for this row tile
    # xh_ref:   (1, halo_b, Wp, Cinp)  halo rows right after the tile (unused if halo_rows==0)
    # w_ref:    (KH, KW, Cinp, Coutp)  conv weights with BN scale folded in
    # bias_ref: (1, Coutp)             folded BN bias
    # o_ref:    (1, TH, Wo, Coutp)
    KH, KW, Cinp, Coutp = w_ref.shape
    _, TH, Wo, _ = o_ref.shape

    x = x_ref[0]                                   # (TS, Wp, Cinp)
    if halo_rows > 0:
        # Append the KH - stride rows belonging to the next row tile (leading-dim concat).
        x = jnp.concatenate([x, xh_ref[0, :halo_rows]], axis=0)

    acc = jnp.zeros((TH * Wo, Coutp), jnp.float32)
    # Static tap loop (KH*KW is small).  With Cinp padded to 128 every tap is a
    # full-depth-K, lane-dense MXU matmul accumulating into a (TH*Wo, 128) f32 acc.
    for kh in range(KH):
        for kw in range(KW):
            xs = jax.lax.slice(
                x,
                (kh, kw, 0),
                (kh + (TH - 1) * stride + 1, kw + (Wo - 1) * stride + 1, Cinp),
                (stride, stride, 1),
            )                                       # (TH, Wo, Cinp)
            acc += jnp.dot(xs.reshape(TH * Wo, Cinp), w_ref[kh, kw],
                           preferred_element_type=jnp.float32)

    y = acc + bias_ref[0]                           # BN scale already folded into weights
    y = jnp.where(y > 0, y, neg_slope * y)          # LeakyReLU
    o_ref[0] = y.reshape(TH, Wo, Coutp).astype(o_ref.dtype)


def _pick_row_tile(Ho, Wo, Wp, Cinp, Coutp, stride, halo_b,
                   itemsize=4, block_budget_bytes=4 * 1024 * 1024):
    """Largest output-row tile TH that divides Ho, keeps (h+1)*TH*stride a multiple of
    the halo block size, fits the per-step VMEM budget, and (preferably) yields >=2
    row tiles with a matmul M of at least 128 rows."""
    cands = [d for d in range(1, Ho + 1)
             if Ho % d == 0 and (d * stride) % halo_b == 0]
    if not cands:
        return None

    def blk_bytes(th):
        return itemsize * ((th * stride + halo_b) * Wp * Cinp + th * Wo * Coutp)

    fitting = [d for d in cands if blk_bytes(d) <= block_budget_bytes] or [min(cands)]
    for pred in (lambda d: d < Ho and d * Wo >= 128,   # >=2 tiles, MXU-sized M
                 lambda d: d * Wo >= 128,              # MXU-sized M
                 lambda d: True):
        sel = [d for d in fitting if pred(d)]
        if sel:
            return max(sel)
    return max(fitting)


def conv_layer_pallas_nhwc(x_nhwc, weight_oihw, gamma, beta, running_mean,
                           running_var, *, stride, padding, eps=1e-5,
                           lrelu_neg_slope=0.1, compute_dtype=jnp.float32):
    """ConvLayer.forward on NHWC input, NHWC output (lane-friendly path for chaining).

    compute_dtype: operand dtype for the conv matmuls (accumulation stays f32).
    bfloat16 halves DMA bytes and runs the MXU natively on v6e/v7x; default f32
    to match PyTorch numerics.
    """
    N, H, W, Cin = x_nhwc.shape
    Cout, Cin_w, KH, KW = weight_oihw.shape
    assert Cin_w == Cin, "weight in_channels mismatch"
    Ho = (H + 2 * padding - KH) // stride + 1
    Wo = (W + 2 * padding - KW) // stride + 1
    Hp, Wp = H + 2 * padding, W + 2 * padding

    Cinp = _round_up(Cin, LANE)
    Coutp = _round_up(Cout, LANE)

    # ---- fold BatchNorm (running stats) into the conv weights / bias ----
    scale = gamma * jax.lax.rsqrt(running_var + eps)               # (Cout,)
    bias = beta - running_mean * scale                             # (Cout,)
    w_hwio = jnp.transpose(weight_oihw, (2, 3, 1, 0)) * scale      # (KH,KW,Cin,Cout)
    w_hwio = jnp.pad(w_hwio, ((0, 0), (0, 0), (0, Cinp - Cin),
                              (0, Coutp - Cout))).astype(compute_dtype)
    bias_p = jnp.pad(bias, (0, Coutp - Cout)).reshape(1, Coutp).astype(jnp.float32)

    # ---- row tiling with an explicit halo block ----
    halo = max(KH - stride, 0)
    halo_b = halo if halo > 0 else 1
    TH = _pick_row_tile(Ho, Wo, Wp, Cinp, Coutp, stride, halo_b)
    if TH is None:
        # Rare fallback (no divisor of Ho satisfies the halo divisibility):
        # one row tile covering the whole padded image, halo block unused.
        TH, n_h = Ho, 1
        TS, halo_rows, halo_b = Hp, 0, 1
    else:
        n_h = Ho // TH
        TS = TH * stride
        halo_rows = halo
    Hp_pad = _round_up(Hp, TS)

    # Spatial + channel zero-padding in one pad (channels land on the lane axis).
    # TODO(synk): border handling inside the kernel would avoid this padded HBM copy.
    x_pad = jnp.pad(
        x_nhwc.astype(compute_dtype),
        ((0, 0), (padding, padding + (Hp_pad - Hp)), (padding, padding),
         (0, Cinp - Cin)))

    ts_per_halo = TS // halo_b                 # integer by construction
    max_halo_blk = Hp_pad // halo_b - 1

    def x_map(n, h):
        return (n, h, 0, 0)

    def halo_map(n, h):
        # Rows immediately after the current tile; clamped (content unused when
        # halo_rows == 0, so the clamp never affects results).
        return (n, jnp.minimum((h + 1) * ts_per_halo, max_halo_blk), 0, 0)

    kernel = functools.partial(_conv_bn_lrelu_kernel, stride=stride,
                               neg_slope=lrelu_neg_slope, halo_rows=halo_rows)

    itemsize = jnp.dtype(compute_dtype).itemsize
    blk_bytes = itemsize * (TS + halo_b) * Wp * Cinp + 4 * TH * Wo * Coutp
    w_bytes = itemsize * KH * KW * Cinp * Coutp
    vmem_limit = int(min(40 * 2**20, max(16 * 2**20, 3 * blk_bytes + w_bytes)))

    out_p = pl.pallas_call(
        kernel,
        out_shape=jax.ShapeDtypeStruct((N, Ho, Wo, Coutp), jnp.float32),
        grid_spec=pltpu.PrefetchScalarGridSpec(
            num_scalar_prefetch=0,
            grid=(N, n_h),
            in_specs=[
                pl.BlockSpec((1, TS, Wp, Cinp), x_map),
                pl.BlockSpec((1, halo_b, Wp, Cinp), halo_map),
                pl.BlockSpec((KH, KW, Cinp, Coutp), lambda n, h: (0, 0, 0, 0)),
                pl.BlockSpec((1, Coutp), lambda n, h: (0, 0)),
            ],
            out_specs=pl.BlockSpec((1, TH, Wo, Coutp), lambda n, h: (n, h, 0, 0)),
        ),
        compiler_params=pltpu.CompilerParams(
            dimension_semantics=("parallel", "parallel"),
            vmem_limit_bytes=vmem_limit),
    )(x_pad, x_pad, w_hwio, bias_p)

    return out_p[..., :Cout]


def conv_layer_pallas(x_nchw, weight_oihw, gamma, beta, running_mean,
                      running_var, *, stride, padding, eps=1e-5,
                      lrelu_neg_slope=0.1):
    """PyTorch-layout entry point: NCHW in, NCHW out (transposes are edge glue)."""
    x_nhwc = jnp.transpose(x_nchw, (0, 2, 3, 1))
    out_nhwc = conv_layer_pallas_nhwc(
        x_nhwc, weight_oihw, gamma, beta, running_mean, running_var,
        stride=stride, padding=padding, eps=eps,
        lrelu_neg_slope=lrelu_neg_slope)
    return jnp.transpose(out_nhwc, (0, 3, 1, 2))


def _reference(x_nchw, weight_oihw, gamma, beta, running_mean, running_var,
               *, stride, padding, eps=1e-5, lrelu_neg_slope=0.1):
    y = jax.lax.conv_general_dilated(
        x_nchw, weight_oihw,
        window_strides=(stride, stride),
        padding=[(padding, padding), (padding, padding)],
        dimension_numbers=("NCHW", "OIHW", "NCHW"),
    )
    scale = (gamma / jnp.sqrt(running_var + eps))[None, :, None, None]
    bias = (beta - running_mean * gamma / jnp.sqrt(running_var + eps)
            )[None, :, None, None]
    y = y * scale + bias
    return jnp.where(y > 0, y, lrelu_neg_slope * y)


if __name__ == "__main__":
    key = jax.random.PRNGKey(0)
    kx, kw3, kw1 = jax.random.split(key, 3)

    # Shapes consistent with a small YOLOv3 ConvLayer.
    N, Cin, H, W = 2, 4, 16, 16
    Cout = 8
    x = jax.random.normal(kx, (N, Cin, H, W), dtype=jnp.float32)

    # Deterministic BatchNorm2d parameters / running stats.
    gamma = 1.0 + 0.1 * jnp.arange(Cout, dtype=jnp.float32)
    beta = 0.05 * jnp.arange(Cout, dtype=jnp.float32)
    running_mean = 0.02 * jnp.arange(Cout, dtype=jnp.float32)
    running_var = 1.0 + 0.03 * jnp.arange(Cout, dtype=jnp.float32)

    # --- test 1: 3x3, stride 1, padding 1 (the classic YOLO conv) ---
    w3 = 0.1 * jax.random.normal(kw3, (Cout, Cin, 3, 3), dtype=jnp.float32)
    out3 = conv_layer_pallas(x, w3, gamma, beta, running_mean, running_var,
                             stride=1, padding=1)
    out3 = jax.block_until_ready(out3)
    ref3 = _reference(x, w3, gamma, beta, running_mean, running_var,
                      stride=1, padding=1)
    assert out3.shape == (N, Cout, H, W)
    assert jnp.allclose(out3, ref3, atol=1e-4, rtol=1e-4), "3x3 mismatch vs reference"

    # --- test 2: 1x1, stride 1, padding 0 (zero-halo path) ---
    w1 = 0.1 * jax.random.normal(kw1, (Cout, Cin, 1, 1), dtype=jnp.float32)
    out1 = conv_layer_pallas(x, w1, gamma, beta, running_mean, running_var,
                             stride=1, padding=0)
    out1 = jax.block_until_ready(out1)
    ref1 = _reference(x, w1, gamma, beta, running_mean, running_var,
                      stride=1, padding=0)
    assert out1.shape == (N, Cout, H, W)
    assert jnp.allclose(out1, ref1, atol=1e-4, rtol=1e-4), "1x1 mismatch vs reference"

    print("KERNEL_OK")
</pallas_src>

<mosaic_0001>
module attributes {stable_mosaic.version = 11 : i64} {
  func.func @_conv_bn_lrelu_kernel(%arg0: i32, %arg1: i32, %arg2: memref<1x8x18x128xf32, #tpu.memory_space<vmem>>, %arg3: memref<1x2x18x128xf32, #tpu.memory_space<vmem>>, %arg4: memref<3x3x128x128xf32, #tpu.memory_space<vmem>>, %arg5: memref<1x128xf32, #tpu.memory_space<vmem>>, %arg6: memref<1x8x16x128xf32, #tpu.memory_space<vmem>>) attributes {dimension_semantics = [#tpu.dimension_semantics<parallel>, #tpu.dimension_semantics<parallel>], iteration_bounds = array<i64: 2, 2>, scalar_prefetch = 0 : i64, scratch_operands = 0 : i64, tpu.core_type = #tpu.core_type<tc>, window_params = [{transform_indices = @transform_0, window_bounds = array<i64: 1, 8, 18, 128>}, {transform_indices = @transform_1, window_bounds = array<i64: 1, 2, 18, 128>}, {pipeline_mode = #tpu.pipeline_mode<synchronous>, transform_indices = @transform_2, window_bounds = array<i64: 3, 3, 128, 128>}, {pipeline_mode = #tpu.pipeline_mode<synchronous>, transform_indices = @transform_3, window_bounds = array<i64: 1, 128>}, {transform_indices = @transform_4, window_bounds = array<i64: 1, 8, 16, 128>}]} {
    %c0 = arith.constant 0 : index
    %c0_0 = arith.constant 0 : index
    %c0_1 = arith.constant 0 : index
    %c0_2 = arith.constant 0 : index
    %0 = vector.load %arg2[%c0, %c0_0, %c0_1, %c0_2] : memref<1x8x18x128xf32, #tpu.memory_space<vmem>>, vector<1x8x18x128xf32>
    %1 = vector.shape_cast %0 : vector<1x8x18x128xf32> to vector<8x18x128xf32>
    %c0_3 = arith.constant 0 : index
    %c0_4 = arith.constant 0 : index
    %c0_5 = arith.constant 0 : index
    %c0_6 = arith.constant 0 : index
    %2 = vector.load %arg3[%c0_3, %c0_4, %c0_5, %c0_6] : memref<1x2x18x128xf32, #tpu.memory_space<vmem>>, vector<1x2x18x128xf32>
    %3 = vector.shape_cast %2 : vector<1x2x18x128xf32> to vector<2x18x128xf32>
    %4 = tpu.concatenate %1, %3 in 0 : vector<8x18x128xf32>, vector<2x18x128xf32> -> vector<10x18x128xf32>
    %cst = arith.constant 0.000000e+00 : f32
    %5 = vector.broadcast %cst : f32 to vector<128x128xf32>
    %6 = vector.extract_strided_slice %4 {offsets = [0, 0, 0], sizes = [8, 16, 128], strides = [1, 1, 1]} : vector<10x18x128xf32> to vector<8x16x128xf32>
    %7 = vector.shape_cast %6 : vector<8x16x128xf32> to vector<128x128xf32>
    %c0_7 = arith.constant 0 : index
    %c0_8 = arith.constant 0 : index
    %c0_9 = arith.constant 0 : index
    %c0_10 = arith.constant 0 : index
    %8 = vector.load %arg4[%c0_7, %c0_8, %c0_9, %c0_10] : memref<3x3x128x128xf32, #tpu.memory_space<vmem>>, vector<1x1x128x128xf32>
    %9 = vector.shape_cast %8 : vector<1x1x128x128xf32> to vector<128x128xf32>
    %cst_11 = arith.constant dense<0.000000e+00> : vector<128x128xf32>
    %10 = tpu.matmul %7, %9, %cst_11 {dimension_numbers = #tpu.dot_dimension_numbers<[1], [0], [0], [1], [0, 0, 1, 1], [], []>} : vector<128x128xf32>, vector<128x128xf32>, vector<128x128xf32> -> vector<128x128xf32>
    %11 = arith.addf %5, %10 : vector<128x128xf32>
    %12 = vector.extract_strided_slice %4 {offsets = [0, 1, 0], sizes = [8, 16, 128], strides = [1, 1, 1]} : vector<10x18x128xf32> to vector<8x16x128xf32>
    %13 = vector.shape_cast %12 : vector<8x16x128xf32> to vector<128x128xf32>
    %c0_12 = arith.constant 0 : index
    %c1 = arith.constant 1 : index
    %c0_13 = arith.constant 0 : index
    %c0_14 = arith.constant 0 : index
    %14 = vector.load %arg4[%c0_12, %c1, %c0_13, %c0_14] : memref<3x3x128x128xf32, #tpu.memory_space<vmem>>, vector<1x1x128x128xf32>
    %15 = vector.shape_cast %14 : vector<1x1x128x128xf32> to vector<128x128xf32>
    %cst_15 = arith.constant dense<0.000000e+00> : vector<128x128xf32>
    %16 = tpu.matmul %13, %15, %cst_15 {dimension_numbers = #tpu.dot_dimension_numbers<[1], [0], [0], [1], [0, 0, 1, 1], [], []>} : vector<128x128xf32>, vector<128x128xf32>, vector<128x128xf32> -> vector<128x128xf32>
    %17 = arith.addf %11, %16 : vector<128x128xf32>
    %18 = vector.extract_strided_slice %4 {offsets = [0, 2, 0], sizes = [8, 16, 128], strides = [1, 1, 1]} : vector<10x18x128xf32> to vector<8x16x128xf32>
    %19 = vector.shape_cast %18 : vector<8x16x128xf32> to vector<128x128xf32>
    %c0_16 = arith.constant 0 : index
    %c2 = arith.constant 2 : index
    %c0_17 = arith.constant 0 : index
    %c0_18 = arith.constant 0 : index
    %20 = vector.load %arg4[%c0_16, %c2, %c0_17, %c0_18] : memref<3x3x128x128xf32, #tpu.memory_space<vmem>>, vector<1x1x128x128xf32>
    %21 = vector.shape_cast %20 : vector<1x1x128x128xf32> to vector<128x128xf32>
    %cst_19 = arith.constant dense<0.000000e+00> : vector<128x128xf32>
    %22 = tpu.matmul %19, %21, %cst_19 {dimension_numbers = #tpu.dot_dimension_numbers<[1], [0], [0], [1], [0, 0, 1, 1], [], []>} : vector<128x128xf32>, vector<128x128xf32>, vector<128x128xf32> -> vector<128x128xf32>
    %23 = arith.addf %17, %22 : vector<128x128xf32>
    %24 = vector.extract_strided_slice %4 {offsets = [1, 0, 0], sizes = [8, 16, 128], strides = [1, 1, 1]} : vector<10x18x128xf32> to vector<8x16x128xf32>
    %25 = vector.shape_cast %24 : vector<8x16x128xf32> to vector<128x128xf32>
    %c1_20 = arith.constant 1 : index
    %c0_21 = arith.constant 0 : index
    %c0_22 = arith.constant 0 : index
    %c0_23 = arith.constant 0 : index
    %26 = vector.load %arg4[%c1_20, %c0_21, %c0_22, %c0_23] : memref<3x3x128x128xf32, #tpu.memory_space<vmem>>, vector<1x1x128x128xf32>
    %27 = vector.shape_cast %26 : vector<1x1x128x128xf32> to vector<128x128xf32>
    %cst_24 = arith.constant dense<0.000000e+00> : vector<128x128xf32>
    %28 = tpu.matmul %25, %27, %cst_24 {dimension_numbers = #tpu.dot_dimension_numbers<[1], [0], [0], [1], [0, 0, 1, 1], [], []>} : vector<128x128xf32>, vector<128x128xf32>, vector<128x128xf32> -> vector<128x128xf32>
    %29 = arith.addf %23, %28 : vector<128x128xf32>
    %30 = vector.extract_strided_slice %4 {offsets = [1, 1, 0], sizes = [8, 16, 128], strides = [1, 1, 1]} : vector<10x18x128xf32> to vector<8x16x128xf32>
    %31 = vector.shape_cast %30 : vector<8x16x128xf32> to vector<128x128xf32>
    %c1_25 = arith.constant 1 : index
    %c1_26 = arith.constant 1 : index
    %c0_27 = arith.constant 0 : index
    %c0_28 = arith.constant 0 : index
    %32 = vector.load %arg4[%c1_25, %c1_26, %c0_27, %c0_28] : memref<3x3x128x128xf32, #tpu.memory_space<vmem>>, vector<1x1x128x128xf32>
    %33 = vector.shape_cast %32 : vector<1x1x128x128xf32> to vector<128x128xf32>
    %cst_29 = arith.constant dense<0.000000e+00> : vector<128x128xf32>
    %34 = tpu.matmul %31, %33, %cst_29 {dimension_numbers = #tpu.dot_dimension_numbers<[1], [0], [0], [1], [0, 0, 1, 1], [], []>} : vector<128x128xf32>, vector<128x128xf32>, vector<128x128xf32> -> vector<128x128xf32>
    %35 = arith.addf %29, %34 : vector<128x128xf32>
    %36 = vector.extract_strided_slice %4 {offsets = [1, 2, 0], sizes = [8, 16, 128], strides = [1, 1, 1]} : vector<10x18x128xf32> to vector<8x16x128xf32>
    %37 = vector.shape_cast %36 : vector<8x16x128xf32> to vector<128x128xf32>
    %c1_30 = arith.constant 1 : index
    %c2_31 = arith.constant 2 : index
    %c0_32 = arith.constant 0 : index
    %c0_33 = arith.constant 0 : index
    %38 = vector.load %arg4[%c1_30, %c2_31, %c0_32, %c0_33] : memref<3x3x128x128xf32, #tpu.memory_space<vmem>>, vector<1x1x128x128xf32>
    %39 = vector.shape_cast %38 : vector<1x1x128x128xf32> to vector<128x128xf32>
    %cst_34 = arith.constant dense<0.000000e+00> : vector<128x128xf32>
    %40 = tpu.matmul %37, %39, %cst_34 {dimension_numbers = #tpu.dot_dimension_numbers<[1], [0], [0], [1], [0, 0, 1, 1], [], []>} : vector<128x128xf32>, vector<128x128xf32>, vector<128x128xf32> -> vector<128x128xf32>
    %41 = arith.addf %35, %40 : vector<128x128xf32>
    %42 = vector.extract_strided_slice %4 {offsets = [2, 0, 0], sizes = [8, 16, 128], strides = [1, 1, 1]} : vector<10x18x128xf32> to vector<8x16x128xf32>
    %43 = vector.shape_cast %42 : vector<8x16x128xf32> to vector<128x128xf32>
    %c2_35 = arith.constant 2 : index
    %c0_36 = arith.constant 0 : index
    %c0_37 = arith.constant 0 : index
    %c0_38 = arith.constant 0 : index
    %44 = vector.load %arg4[%c2_35, %c0_36, %c0_37, %c0_38] : memref<3x3x128x128xf32, #tpu.memory_space<vmem>>, vector<1x1x128x128xf32>
    %45 = vector.shape_cast %44 : vector<1x1x128x128xf32> to vector<128x128xf32>
    %cst_39 = arith.constant dense<0.000000e+00> : vector<128x128xf32>
    %46 = tpu.matmul %43, %45, %cst_39 {dimension_numbers = #tpu.dot_dimension_numbers<[1], [0], [0], [1], [0, 0, 1, 1], [], []>} : vector<128x128xf32>, vector<128x128xf32>, vector<128x128xf32> -> vector<128x128xf32>
    %47 = arith.addf %41, %46 : vector<128x128xf32>
    %48 = vector.extract_strided_slice %4 {offsets = [2, 1, 0], sizes = [8, 16, 128], strides = [1, 1, 1]} : vector<10x18x128xf32> to vector<8x16x128xf32>
    %49 = vector.shape_cast %48 : vector<8x16x128xf32> to vector<128x128xf32>
    %c2_40 = arith.constant 2 : index
    %c1_41 = arith.constant 1 : index
    %c0_42 = arith.constant 0 : index
    %c0_43 = arith.constant 0 : index
    %50 = vector.load %arg4[%c2_40, %c1_41, %c0_42, %c0_43] : memref<3x3x128x128xf32, #tpu.memory_space<vmem>>, vector<1x1x128x128xf32>
    %51 = vector.shape_cast %50 : vector<1x1x128x128xf32> to vector<128x128xf32>
    %cst_44 = arith.constant dense<0.000000e+00> : vector<128x128xf32>
    %52 = tpu.matmul %49, %51, %cst_44 {dimension_numbers = #tpu.dot_dimension_numbers<[1], [0], [0], [1], [0, 0, 1, 1], [], []>} : vector<128x128xf32>, vector<128x128xf32>, vector<128x128xf32> -> vector<128x128xf32>
    %53 = arith.addf %47, %52 : vector<128x128xf32>
    %54 = vector.extract_strided_slice %4 {offsets = [2, 2, 0], sizes = [8, 16, 128], strides = [1, 1, 1]} : vector<10x18x128xf32> to vector<8x16x128xf32>
    %55 = vector.shape_cast %54 : vector<8x16x128xf32> to vector<128x128xf32>
    %c2_45 = arith.constant 2 : index
    %c2_46 = arith.constant 2 : index
    %c0_47 = arith.constant 0 : index
    %c0_48 = arith.constant 0 : index
    %56 = vector.load %arg4[%c2_45, %c2_46, %c0_47, %c0_48] : memref<3x3x128x128xf32, #tpu.memory_space<vmem>>, vector<1x1x128x128xf32>
    %57 = vector.shape_cast %56 : vector<1x1x128x128xf32> to vector<128x128xf32>
    %cst_49 = arith.constant dense<0.000000e+00> : vector<128x128xf32>
    %58 = tpu.matmul %55, %57, %cst_49 {dimension_numbers = #tpu.dot_dimension_numbers<[1], [0], [0], [1], [0, 0, 1, 1], [], []>} : vector<128x128xf32>, vector<128x128xf32>, vector<128x128xf32> -> vector<128x128xf32>
    %59 = arith.addf %53, %58 : vector<128x128xf32>
    %c0_50 = arith.constant 0 : index
    %c0_51 = arith.constant 0 : index
    %60 = vector.load %arg5[%c0_50, %c0_51] : memref<1x128xf32, #tpu.memory_space<vmem>>, vector<1x128xf32>
    %61 = vector.shape_cast %60 : vector<1x128xf32> to vector<128xf32>
    %62 = vector.shape_cast %61 : vector<128xf32> to vector<1x128xf32>
    %63 = vector.broadcast %62 : vector<1x128xf32> to vector<128x128xf32>
    %64 = arith.addf %59, %63 : vector<128x128xf32>
    %cst_52 = arith.constant 0.000000e+00 : f32
    %65 = vector.broadcast %cst_52 : f32 to vector<128x128xf32>
    %66 = arith.cmpf ogt, %64, %65 : vector<128x128xf32>
    %cst_53 = arith.constant 1.000000e-01 : f32
    %67 = vector.broadcast %cst_53 : f32 to vector<128x128xf32>
    %68 = arith.mulf %67, %64 : vector<128x128xf32>
    %69 = arith.select %66, %64, %68 : vector<128x128xi1>, vector<128x128xf32>
    %70 = vector.shape_cast %69 : vector<128x128xf32> to vector<8x16x128xf32>
    %c0_54 = arith.constant 0 : index
    %c0_55 = arith.constant 0 : index
    %c0_56 = arith.constant 0 : index
    %c0_57 = arith.constant 0 : index
    %71 = vector.load %arg6[%c0_54, %c0_55, %c0_56, %c0_57] : memref<1x8x16x128xf32, #tpu.memory_space<vmem>>, vector<1x8x16x128xf32>
    %72 = vector.shape_cast %71 : vector<1x8x16x128xf32> to vector<8x16x128xf32>
    %73 = vector.shape_cast %70 : vector<8x16x128xf32> to vector<1x8x16x128xf32>
    tpu.vector_store %arg6[%c0_54, %c0_55, %c0_56, %c0_57], %73 {strides = array<i32>} : memref<1x8x16x128xf32, #tpu.memory_space<vmem>>, vector<1x8x16x128xf32>,
    return
  }
  func.func @transform_0(%arg0: i32, %arg1: i32) -> (i32, i32, i32, i32) {
    %c0_i32 = arith.constant 0 : i32
    %c0_i32_0 = arith.constant 0 : i32
    %c0_i32_1 = arith.constant 0 : i32
    return %arg0, %arg1, %c0_i32, %c0_i32_0 : i32, i32, i32, i32
  }
  func.func @transform_1(%arg0: i32, %arg1: i32) -> (i32, i32, i32, i32) {
    %c1_i32 = arith.constant 1 : i32
    %0 = arith.addi %arg1, %c1_i32 : i32
    %c4_i32 = arith.constant 4 : i32
    %1 = arith.muli %0, %c4_i32 : i32
    %c11_i32 = arith.constant 11 : i32
    %2 = arith.minsi %1, %c11_i32 : i32
    %c0_i32 = arith.constant 0 : i32
    %c0_i32_0 = arith.constant 0 : i32
    %c0_i32_1 = arith.constant 0 : i32
    return %arg0, %2, %c0_i32, %c0_i32_0 : i32, i32, i32, i32
  }
  func.func @transform_2(%arg0: i32, %arg1: i32) -> (i32, i32, i32, i32) {
    %c0_i32 = arith.constant 0 : i32
    %c0_i32_0 = arith.constant 0 : i32
    %c0_i32_1 = arith.constant 0 : i32
    %c0_i32_2 = arith.constant 0 : i32
    %c0_i32_3 = arith.constant 0 : i32
    return %c0_i32, %c0_i32_0, %c0_i32_1, %c0_i32_2 : i32, i32, i32, i32
  }
  func.func @transform_3(%arg0: i32, %arg1: i32) -> (i32, i32) {
    %c0_i32 = arith.constant 0 : i32
    %c0_i32_0 = arith.constant 0 : i32
    %c0_i32_1 = arith.constant 0 : i32
    return %c0_i32, %c0_i32_0 : i32, i32
  }
  func.func @transform_4(%arg0: i32, %arg1: i32) -> (i32, i32, i32, i32) {
    %c0_i32 = arith.constant 0 : i32
    %c0_i32_0 = arith.constant 0 : i32
    %c0_i32_1 = arith.constant 0 : i32
    return %arg0, %arg1, %c0_i32, %c0_i32_0 : i32, i32, i32, i32
  }
}

</mosaic_0001>

<bundles_post_ra>
// kernel: tpu_custom_call.1
= control target key start
LH: loop header
LB: loop body
LE: loop exit
PB: predicated region body
PF: predicated region fallthrough
CT: control target
= control target key end

     0   :  { %9 = vsyncpa [#allocation3], 0  ;;  %s4942_s0 = inlined_call_operand.vmem [shape: f32[2,24,18,128], index: 0, kind: input, shape index: {}]   ;;  %s4943_s1 = inlined_call_operand.vmem [shape: f32[2,24,18,128], index: 1, kind: input, shape index: {}]   ;;  %s4944_s2 = inlined_call_operand.vmem [shape: f32[3,3,128,128], index: 2, kind: input, shape index: {}]   ;;  %s4945_s3 = inlined_call_operand.vmem [shape: f32[1,128], index: 3, kind: input, shape index: {}]   ;;  %s4946_s4 = inlined_call_operand.hbm [shape: f32[2,16,16,128], index: 4, kind: output, shape index: {}]  }
   0x1   :  { %11 = vsyncpa [#allocation3 + $0x1], 0  ;;  %s3860_s15 = smov 0   ;;  %s3862_s16 = smov 0  }
   0x2   :  { %s3864_s17 = smov 0   ;;  %s3866_s18 = smov 0  }
   0x3   :  { %s3868_s19 = smov 0   ;;  %s3870_s20 = smov 0  }
   0x4   :  { %s3872_s21 = smov 0   ;;  %s3874_s22 = smov 0  }
   0x5 LB: > { %s2278_s23 = sadd.s32 4294967295, %s3830_s22   ;;  %s2279_s24 = sadd.s32 4294967294, %s3830_s22   ;;  %s3830_s22 = sphi %s3874_s22, %s17_s22   ;;  %s3826_s21 = sphi %s3872_s21, %s4960_s21   ;;  %s3822_s20 = sphi %s3870_s20, %s4959_s20   ;;  %s3818_s19 = sphi %s3868_s19, %s4958_s19   ;;  %s3814_s18 = sphi %s3866_s18, %s4957_s18   ;;  %s3810_s17 = sphi %s3864_s17, %s4956_s17   ;;  %s3806_s16 = sphi %s3862_s16, %s4955_s16   ;;  %s3802_s15 = sphi %s3860_s15, %s4954_s15  }
   0x6   : > { %s26_s25 = sadd.s32 1, %s3822_s20  ;;  %s29_s26 = sadd.s32 1, %s3826_s21 }
   0x7   : > { %p27_p0 = scmp.ge.s32.totalorder %s26_s25, 2  ;;  %p154_p1 = scmp.ne.s32.totalorder %s3810_s17, %s3806_s16 }
   0x8   : > { %p155_p2 = scmp.eq.s32.totalorder %s2278_s23, 3  ;;  %p160_p5 = scmp.ne.s32.totalorder %s3806_s16, %s3802_s15 }
   0x9   : > { %s4962_s25 = smov (%p27_p0, %s26_s25), 0  ;;  %s4964_s26 = smov (!%p27_p0, %s29_s26), %s3826_s21 }
   0xa   : > { %s140_s27 = ssub.s32 %s3822_s20, %s4962_s25  ;;  %p3911_p3 = por %p155_p2, %p154_p1 }
   0xb   : > { %p31_p4 = scmp.ge.s32.totalorder %s4964_s26, 2  ;;  %p161_p6 = scmp.eq.s32.totalorder %s2279_s24, 3 }
   0xc   : > { %p2284_p7 = scmp.ge.s32.totalorder %s3830_s22, 1  ;;  %p221_p9 = scmp.lt.s32.totalorder %s3830_s22, 5 }
   0xd   : > { %s4966_s26 = smov (%p31_p4, %s4964_s26), 0  ;;  %p3920_p8 = por %p161_p6, %p160_p5 }
   0xe   : > { %s139_s30 = ssub.s32 %s3826_s21, %s4966_s26  ;;  %s144_s5 = sadd.s32 1, %s3810_s17 }
   0xf   : > { %s141_s6 = sor.u32 %s140_s27, %s139_s30  ;;  %p222_p10 = pnand %p2284_p7, %p221_p9 }
  0x10   : > { %p142_p11 = scmp.eq.s32.totalorder %s141_s6, 0 }
  0x11   : > { %225 = sbr.rel (%p222_p10) target bundleno = 440 (0x1b8), region = 36 }
  0x12   : > { %s3929_s7 = scalar_select %p142_p11, %s3810_s17, %s144_s5  }
  0x18   : > { %v2291_v0 = vld [vmem:[%s4944_s2 + $0x80] sm:$0xff]  ;;  %v2292_v1 = vld [vmem:[%s4944_s2 + $0x88] sm:$0xff]  ;;  %s2286_s14 = sshll.u32 %s3814_s18, 3  ;;  %p267_p12 = scmp.lt.s32.totalorder %s3818_s19, 1  ;;  %v2293_v5 = vld [vmem:[%s4944_s2 + $0x90] sm:$0xff]  ;;  %vm367_vm0 = vcmask 1046528  }
  0x19   : > { %v2339_v2 = vld [vmem:[%s4944_s2 + $0x200] sm:$0xff]  ;;  %v3226_v3 = vpack.c.bf16 %v2292_v1, %v2291_v0  ;;  %v2340_v4 = vld [vmem:[%s4944_s2 + $0x208] sm:$0xff]  ;;  %v2294_v6 = vld [vmem:[%s4944_s2 + $0x98] sm:$0xff]  ;;  %p269_p13 = scmp.lt.s32.totalorder %s2286_s14, 23  ;;  %s2431_s27 = sshll.u32 %s3814_s18, 2  ;;  %vm731_vm1 = vcmask 1045504  }
  0x1a   : > { %v3354_v7 = vpack.c.bf16 %v2340_v4, %v2339_v2  ;;  %v3230_v8 = vpack.c.bf16 %v2294_v6, %v2293_v5  ;;  %v2341_v9 = vld [vmem:[%s4944_s2 + $0x210] sm:$0xff]  ;;  %v2342_v10 = vld [vmem:[%s4944_s2 + $0x218] sm:$0xff]  ;;  %v2295_v11 = vld [vmem:[%s4944_s2 + $0xa0] sm:$0xff]  ;;  %s3961_s23 = scalar_select %p267_p12, %s3818_s19, 1 }
  0x1b   : > { %3227 = vmatprep.subr.bf16.mxu1 %v3226_v3  ;;  %v3358_v12 = vpack.c.bf16 %v2342_v10, %v2341_v9  ;;  %v2296_v13 = vld [vmem:[%s4944_s2 + $0xa8] sm:$0xff]  ;;  %v2343_v14 = vld [vmem:[%s4944_s2 + $0x220] sm:$0xff]  ;;  %s4968_s14 = smov (!%p269_p13, %s2286_s14), 23  ;;  %v2297_v18 = vld [vmem:[%s4944_s2 + $0xb0] sm:$0xff]  ;;  %s2432_s11 = sadd.s32 4, %s2431_s27 }
  0x1c   : > { %v2344_v15 = vld [vmem:[%s4944_s2 + $0x228] sm:$0xff]  ;;  %3355 = vmatprep.subr.bf16.mxu0 %v3354_v7  ;;  %3229 = vmatpush3.bf16.msra.mxu1 %v3226_v3  ;;  %s3659_s9 = smul.u32 72, %s3961_s23  ;;  %v3234_v16 = vpack.c.bf16 %v2296_v13, %v2295_v11  ;;  %v2298_v19 = vld [vmem:[%s4944_s2 + $0xb8] sm:$0xff]  ;;  %v2345_v20 = vld [vmem:[%s4944_s2 + $0x230] sm:$0xff]  ;;  %p279_p0 = scmp.lt.s32.totalorder %s2432_s11, 11 }
  0x1d   : > { %3357 = vmatpush3.bf16.msra.mxu0 %v3354_v7  ;;  %3231 = vmatprep.subr.bf16.mxu1 %v3230_v8  ;;  %s3658_s10 = smul.u32 3, %s4968_s14  ;;  %v3362_v17 = vpack.c.bf16 %v2344_v15, %v2343_v14  ;;  %v2346_v21 = vld [vmem:[%s4944_s2 + $0x238] sm:$0xff]  ;;  %v3238_v22 = vpack.c.bf16 %v2298_v19, %v2297_v18  ;;  %v2299_v23 = vld [vmem:[%s4944_s2 + $0xc0] sm:$0xff]  ;;  %v2300_v24 = vld [vmem:[%s4944_s2 + $0xc8] sm:$0xff]  ;;  %s2433_s23 = sshll.u32 %s3814_s18, 4 }
  0x1e   : > { %3359 = vmatprep.subr.bf16.mxu0 %v3358_v12  ;;  %v3366_v25 = vpack.c.bf16 %v2346_v21, %v2345_v20  ;;  %v2347_v26 = vld [vmem:[%s4944_s2 + $0x240] sm:$0xff]  ;;  %v2348_v27 = vld [vmem:[%s4944_s2 + $0x248] sm:$0xff]  ;;  %v3242_v36 = vpack.c.bf16 %v2300_v24, %v2299_v23  ;;  %v2301_v38 = vld [vmem:[%s4944_s2 + $0xd0] sm:$0xff]  ;;  %s4970_s11 = smov (!%p279_p0, %s2432_s11), 11  ;;  %s3832_s12 = smov [#allocation2]  }
  0x1f   : > { %s273_s14 = sadd.s32 %s3659_s9, %s3658_s10  ;;  %v3370_v37 = vpack.c.bf16 %v2348_v27, %v2347_v26  ;;  %v2302_v39 = vld [vmem:[%s4944_s2 + $0xd8] sm:$0xff]  ;;  %v2349_v42 = vld [vmem:[%s4944_s2 + $0x250] sm:$0xff]  ;;  %v2303_v46 = vld [vmem:[%s4944_s2 + $0xe0] sm:$0xff]  ;;  %s2289_s6 = sshll.u32 %s4970_s11, 1 }
  0x20   : > { %3233 = vmatpush3.bf16.msra.mxu1 %v3230_v8  ;;  %s2287_s8 = sshll.u32 %s273_s14, 3  ;;  %v2350_v43 = vld [vmem:[%s4944_s2 + $0x258] sm:$0xff]  ;;  %v3246_v44 = vpack.c.bf16 %v2302_v39, %v2301_v38  ;;  %v2304_v47 = vld [vmem:[%s4944_s2 + $0xe8] sm:$0xff]  ;;  %v2351_v48 = vld [vmem:[%s4944_s2 + $0x260] sm:$0xff]  ;;  %p4111_p1 = scmp.lt.s32.totalorder %s2289_s6, 23 }
  0x21   : > { %3361 = vmatpush3.bf16.msra.mxu0 %v3358_v12  ;;  %3235 = vmatprep.subr.bf16.mxu1 %v3234_v16  ;;  %s3996_s5 = scalar_lea.vmem %s4942_s0, %s2287_s8  ;;  %v3374_v45 = vpack.c.bf16 %v2350_v43, %v2349_v42  ;;  %v2352_v49 = vld [vmem:[%s4944_s2 + $0x268] sm:$0xff]  ;;  %v3250_v50 = vpack.c.bf16 %v2304_v47, %v2303_v46  ;;  %v2305_v52 = vld [vmem:[%s4944_s2 + $0xf0] sm:$0xff]  ;;  %v2306_v53 = vld [vmem:[%s4944_s2 + $0xf8] sm:$0xff]  ;;  %s3740_s13 = sshll.u32 %s3832_s12, 4  ;;  %s3741_s13 = int_to_ptr.vmem [resolvable:$false] %s3740_s13 }
  0x22   : > { %3363 = vmatprep.subr.bf16.mxu0 %v3362_v17  ;;  %v4005_v28 = vld [vmem:[%s3996_s5] sm:$0xff]  ;;  %v4008_v29 = vld [vmem:[%s3996_s5 + $0x8] sm:$0xff]  ;;  %v4012_v31 = vld [vmem:[%s3996_s5 + $0x18] sm:$0xff]  ;;  %v3378_v51 = vpack.c.bf16 %v2352_v49, %v2351_v48  ;;  %v3254_v56 = vpack.c.bf16 %v2306_v53, %v2305_v52  ;;  %s4972_s6 = smov (!%p4111_p1, %s2289_s6), 23 }
  0x23   : > { %v368_v30 = vrot.slane %v4005_v28, 1  ;;  %v4015_v32 = vld [vmem:[%s3996_s5 + $0x20] sm:$0xff]  ;;  %v369_v33 = vrot.slane %v4008_v29, 1  ;;  %v373_v34 = vrot.slane %v4012_v31, 1  ;;  %v2353_v54 = vld [vmem:[%s4944_s2 + $0x270] sm:$0xff]  ;;  %v2354_v55 = vld [vmem:[%s4944_s2 + $0x278] sm:$0xff] }
  0x24   : > { %3237 = vmatpush3.bf16.msra.mxu1 %v3234_v16  ;;  %v374_v35 = vrot.slane %v4015_v32, 1  ;;  %v4069_v57 = vld [vmem:[%s3996_s5 + $0x10] sm:$0x3]  ;;  %v3382_v58 = vpack.c.bf16 %v2354_v55, %v2353_v54  ;;  %v327_v59 = vld [vmem:[%s4944_s2] sm:$0xff]  ;;  %v328_v60 = vld [vmem:[%s4944_s2 + $0x8] sm:$0xff]  ;;  %s3660_s27 = smul.u32 3, %s4972_s6 }
  0x25   : > { %3365 = vmatpush3.bf16.msra.mxu0 %v3362_v17  ;;  %3239 = vmatprep.subr.bf16.mxu1 %v3238_v22  ;;  %v370_v40 = vsel %vm367_vm0, %v368_v30, %v369_v33  ;;  %v4078_v61 = vld [vmem:[%s3996_s5 + $0x28] sm:$0x3]  ;;  %v2355_v62 = vld [vmem:[%s4944_s2 + $0x280] sm:$0xff]  ;;  %v371_v0 = vrot.slane %v4069_v57, 1  ;;  %v4088_v1 = vld [vmem:[%s3996_s5 + $0x30] sm:$0xff]  ;;  %v3258_v3 = vpack.c.bf16 %v328_v60, %v327_v59  ;;  %v732_v47 = vrot.slane %v4005_v28, 2 }
  0x26   : > { %3367 = vmatprep.subr.bf16.mxu0 %v3366_v25  ;;  %v4032_v41 = vsel %vm367_vm0, %v373_v34, %v374_v35  ;;  %2754 = vmatprep.mubr.f32.mxu1 %v370_v40  ;;  %v2356_v63 = vld [vmem:[%s4944_s2 + $0x288] sm:$0xff]  ;;  %v4091_v2 = vld [vmem:[%s3996_s5 + $0x38] sm:$0xff]  ;;  %v376_v4 = vrot.slane %v4078_v61, 1  ;;  %v4096_v6 = vld [vmem:[%s3996_s5 + $0x40] sm:$0x3]  ;;  %v378_v7 = vrot.slane %v4088_v1, 1  ;;  %s4226_s24 = sadd.s32 %s3660_s27, %s3659_s9 }
  0x27   : > { %2978 = vmatprep.mubr.f32.mxu0 %v4032_v41  ;;  %v3386_v5 = vpack.c.bf16 %v2356_v63, %v2355_v62  ;;  %v379_v8 = vrot.slane %v4091_v2, 1  ;;  %v329_v9 = vld [vmem:[%s4944_s2 + $0x10] sm:$0xff]  ;;  %v330_v10 = vld [vmem:[%s4944_s2 + $0x18] sm:$0xff]  ;;  %v372_v12 = vsel %vm367_vm0, %v369_v33, %v371_v0  ;;  %v4122_v14 = vld [vmem:[%s3996_s5 + $0x48] sm:$0xff]  ;;  %v381_v17 = vrot.slane %v4096_v6, 1  ;;  %s2290_s27 = sshll.u32 %s4226_s24, 3 }
  0x28   : > { %3241 = vmatpush3.bf16.msra.mxu1 %v3238_v22  ;;  %v2357_v11 = vld [vmem:[%s4944_s2 + $0x290] sm:$0xff]  ;;  %v2358_v13 = vld [vmem:[%s4944_s2 + $0x298] sm:$0xff]  ;;  %v377_v16 = vsel %vm367_vm0, %v374_v35, %v376_v4  ;;  %v3262_v18 = vpack.c.bf16 %v330_v10, %v329_v9  ;;  %v331_v19 = vld [vmem:[%s4944_s2 + $0x20] sm:$0xff]  ;;  %v383_v23 = vrot.slane %v4122_v14, 1  ;;  %v733_v52 = vrot.slane %v4008_v29, 2  ;;  %s4287_s14 = scalar_lea.vmem %s4943_s1, %s2290_s27 }
  0x29   : > { %3369 = vmatpush3.bf16.msra.mxu0 %v3366_v25  ;;  %3243 = vmatprep.subr.bf16.mxu1 %v3242_v36  ;;  %v4125_v15 = vld [vmem:[%s3996_s5 + $0x50] sm:$0xff]  ;;  %v4135_v20 = vld [vmem:[%s3996_s5 + $0x58] sm:$0x3]  ;;  %v4138_v21 = vsel %vm367_vm0, %v378_v7, %v379_v8  ;;  %v3390_v22 = vpack.c.bf16 %v2358_v13, %v2357_v11  ;;  %v332_v25 = vld [vmem:[%s4944_s2 + $0x28] sm:$0xff]  ;;  %v4165_v34 = vsel %vm367_vm0, %v379_v8, %v381_v17 }
  0x2a   : > { %3371 = vmatprep.subr.bf16.mxu0 %v3370_v37  ;;  %v384_v24 = vrot.slane %v4125_v15, 1  ;;  %v4146_v26 = vld [vmem:[%s3996_s5 + $0x60] sm:$0xff]  ;;  %v4149_v27 = vld [vmem:[%s3996_s5 + $0x68] sm:$0xff]  ;;  %v386_v35 = vrot.slane %v4135_v20, 1  ;;  %v333_v39 = vld [vmem:[%s4944_s2 + $0x30] sm:$0xff]  ;;  %v4229_v63 = vsel %vm731_vm1, %v732_v47, %v733_v52 }
  0x2b   : > { %v2359_v30 = vld [vmem:[%s4944_s2 + $0x2a0] sm:$0xff]  ;;  %v2360_v33 = vld [vmem:[%s4944_s2 + $0x2a8] sm:$0xff]  ;;  %v389_v38 = vrot.slane %v4149_v27, 1  ;;  %v4175_v40 = vld [vmem:[%s3996_s5 + $0x70] sm:$0x3] }
  0x2c   : > { %3245 = vmatpush3.bf16.msra.mxu1 %v3242_v36  ;;  %v3266_v36 = vpack.c.bf16 %v332_v25, %v331_v19  ;;  %v4179_v42 = vsel %vm367_vm0, %v383_v23, %v384_v24  ;;  %v3394_v43 = vpack.c.bf16 %v2360_v33, %v2359_v30  ;;  %v2362_v46 = vld [vmem:[%s4944_s2 + $0x2b8] sm:$0xff]  ;;  %v4197_v49 = vld [vmem:[%s3996_s5 + $0x80] sm:$0xff]  ;;  %v336_v60 = vld [vmem:[%s4944_s2 + $0x48] sm:$0xff] }
  0x2d   : > { %3373 = vmatpush3.bf16.msra.mxu0 %v3370_v37  ;;  %3247 = vmatprep.subr.bf16.mxu1 %v3246_v44  ;;  %v388_v37 = vrot.slane %v4146_v26, 1  ;;  %v4194_v48 = vld [vmem:[%s3996_s5 + $0x78] sm:$0xff]  ;;  %v335_v59 = vld [vmem:[%s4944_s2 + $0x40] sm:$0xff]  ;;  %v4239_v4 = vld [vmem:[%s3996_s5 + $0x90] sm:$0xff] }
  0x2e   : > { %3375 = vmatprep.subr.bf16.mxu0 %v3374_v45  ;;  %v2363_v62 = vld [vmem:[%s4944_s2 + $0x2c0] sm:$0xff]  ;;  %v3274_v9 = vpack.c.bf16 %v336_v60, %v335_v59  ;;  %v337_v10 = vld [vmem:[%s4944_s2 + $0x50] sm:$0xff]  ;;  %v4267_v19 = vld [vmem:[%s3996_s5 + $0xa8] sm:$0xff] }
  0x2f   : > { %v4207_v53 = vsel %vm367_vm0, %v388_v37, %v389_v38  ;;  %v4254_v11 = vld [vmem:[%s3996_s5 + $0xa0] sm:$0x3]  ;;  %v2365_v23 = vld [vmem:[%s4944_s2 + $0x2d0] sm:$0xff] }
  0x30   : > { %3249 = vmatpush3.bf16.msra.mxu1 %v3246_v44  ;;  %v334_v44 = vld [vmem:[%s4944_s2 + $0x38] sm:$0xff]  ;;  %v401_v30 = vrot.slane %v4254_v11, 1  ;;  %v339_v37 = vld [vmem:[%s4944_s2 + $0x60] sm:$0xff] }
  0x31   : > { %3377 = vmatpush3.bf16.msra.mxu0 %v3374_v45  ;;  %3251 = vmatprep.subr.bf16.mxu1 %v3250_v50  ;;  %v2361_v45 = vld [vmem:[%s4944_s2 + $0x2b0] sm:$0xff]  ;;  %v3270_v54 = vpack.c.bf16 %v334_v44, %v333_v39  ;;  %v4299_v39 = vld [vmem:[%s4287_s14 + $0x18] sm:$0xff]  ;;  %v340_v44 = vld [vmem:[%s4944_s2 + $0x68] sm:$0xff] }
  0x32   : > { %3379 = vmatprep.subr.bf16.mxu0 %v3378_v51  ;;  %v3398_v55 = vpack.c.bf16 %v2362_v46, %v2361_v45  ;;  %v2367_v45 = vld [vmem:[%s4944_s2 + $0x2e0] sm:$0xff]  ;;  %v1698_v46 = vrot.slane %v4299_v39, 1  ;;  %v1883_v47 = vrot.slane %v4299_v39, 2 }
  0x34   : > { %3253 = vmatpush3.bf16.msra.mxu1 %v3250_v50  ;;  %v4201_v50 = vsel %vm367_vm0, %v384_v24, %v386_v35  ;;  %v2366_v24 = vld [vmem:[%s4944_s2 + $0x2d8] sm:$0xff]  ;;  %v403_v35 = vrot.slane %v4267_v19, 1 }
  0x35   : > { %3381 = vmatpush3.bf16.msra.mxu0 %v3378_v51  ;;  %3255 = vmatprep.subr.bf16.mxu1 %v3254_v56  ;;  %v391_v51 = vrot.slane %v4175_v40, 1 }
  0x36   : > { %3383 = vmatprep.subr.bf16.mxu0 %v3382_v58 }
  0x37   : > { %v4246_v7 = vsel %vm367_vm0, %v389_v38, %v391_v51  ;;  %v4296_v38 = vld [vmem:[%s3996_s5 + $0xb8] sm:$0x3]  ;;  %v4314_v51 = vld [vmem:[%s4287_s14 + $0x20] sm:$0xff] }
  0x38   : > { %3257 = vmatpush3.bf16.msra.mxu1 %v3254_v56  ;;  %v4210_v56 = vld [vmem:[%s3996_s5 + $0x88] sm:$0x3]  ;;  %v406_v60 = vrot.slane %v4296_v38, 1 }
  0x39   : > { %3385 = vmatpush3.bf16.msra.mxu0 %v3382_v58  ;;  %3259 = vmatprep.subr.bf16.mxu1 %v3258_v3  ;;  %v394_v58 = vrot.slane %v4197_v49, 1  ;;  %v396_v8 = vrot.slane %v4210_v56, 1 }
  0x3a   : > { %3387 = vmatprep.subr.bf16.mxu0 %v3386_v5 }
  0x3b   : > { %2755 = vmatmul.mubr.f32.vlgmr.msra.gmra.mrb[0].mxu1 %v372_v12  ;;  %v4281_v25 = vsel %vm367_vm0, %v394_v58, %v396_v8  ;;  %v4338_v8 = vld [vmem:[%s4287_s14 + $0x10] sm:$0x3] }
  0x3c   : > { %2979 = vmatmul.mubr.f32.vlgmr.msra.gmra.mrb[0].mxu0 %v377_v16  ;;  %3261 = vmatpush3.bf16.msra.mxu1 %v3258_v3  ;;  %v2364_v3 = vld [vmem:[%s4944_s2 + $0x2c8] sm:$0xff] }
  0x3d   : > { %3389 = vmatpush3.bf16.msra.mxu0 %v3386_v5  ;;  %2757 = vmatprep.mubr.f32.mxu1 %v4032_v41  ;;  %v735_v41 = vrot.slane %v4069_v57, 2  ;;  %v393_v57 = vrot.slane %v4194_v48, 1  ;;  %v4242_v5 = vld [vmem:[%s3996_s5 + $0x98] sm:$0xff]  ;;  %v3402_v13 = vpack.c.bf16 %v2364_v3, %v2363_v62  ;;  %v3282_v3 = vpack.c.bf16 %v340_v44, %v339_v37  ;;  %v326_v44 = vld [vmem:[%s4287_s14 + $0x28] sm:$0x3] }
  0x3e   : > { %2981 = vmatprep.mubr.f32.mxu0 %v4138_v21  ;;  %3263 = vmatprep.subr.bf16.mxu1 %v3262_v18  ;;  %v399_v17 = vrot.slane %v4242_v5, 1  ;;  %v1150_v37 = vrot.slane %v4338_v8, 1 }
  0x3f   : > { %2758 = vmatmul.mubr.f32.gmra.mrb[2].mxu1 %v377_v16  ;;  %3391 = vmatprep.subr.bf16.mxu0 %v3390_v22  ;;  %v4232_v0 = vsel %vm731_vm1, %v733_v52, %v735_v41  ;;  %v4259_v12 = vsel %vm367_vm0, %v393_v57, %v394_v58  ;;  %v398_v16 = vrot.slane %v4239_v4, 1  ;;  %v2368_v52 = vld [vmem:[%s4944_s2 + $0x2e8] sm:$0xff]  ;;  %v1699_v57 = vrot.slane %v4314_v51, 1 }
  0x40   : > { %2982 = vmatmul.mubr.f32.gmra.mrb[2].mxu0 %v4165_v34  ;;  %3265 = vmatpush3.bf16.msra.mxu1 %v3262_v18  ;;  %v338_v18 = vld [vmem:[%s4944_s2 + $0x58] sm:$0xff]  ;;  %v1884_v58 = vrot.slane %v4314_v51, 2  ;;  %v4330_v59 = vsel %vm367_vm0, %v399_v17, %v401_v30 }
  0x41   : > { %3393 = vmatpush3.bf16.msra.mxu0 %v3390_v22  ;;  %2760 = vmatprep.mubr.f32.mxu1 %v4138_v21  ;;  %v4270_v22 = vld [vmem:[%s3996_s5 + $0xb0] sm:$0xff]  ;;  %v3278_v33 = vpack.c.bf16 %v338_v18, %v337_v10  ;;  %v4303_v41 = vsel %vm367_vm0, %v398_v16, %v399_v17  ;;  %v3410_v10 = vpack.c.bf16 %v2368_v52, %v2367_v45  ;;  %v342_v18 = vld [vmem:[%s4944_s2 + $0x78] sm:$0xff]  ;;  %v1701_v45 = vrot.slane %v326_v44, 1 }
  0x42   : > { %2984 = vmatprep.mubr.f32.mxu0 %v4179_v42  ;;  %3267 = vmatprep.subr.bf16.mxu1 %v3266_v36  ;;  %v341_v17 = vld [vmem:[%s4944_s2 + $0x70] sm:$0xff]  ;;  %v2370_v30 = vld [vmem:[%s4944_s2 + $0x2f8] sm:$0xff]  ;;  %v737_v52 = vrot.slane %v4012_v31, 2 }
  0x43   : > { %2761 = vmatmul.mubr.f32.gmra.mrb[4].mxu1 %v4165_v34  ;;  %3395 = vmatprep.subr.bf16.mxu0 %v3394_v43 }
  0x44   : > { %2985 = vmatmul.mubr.f32.gmra.mrb[4].mxu0 %v4201_v50  ;;  %3269 = vmatpush3.bf16.msra.mxu1 %v3266_v36  ;;  %v404_v36 = vrot.slane %v4270_v22, 1 }
  0x45   : > { %3397 = vmatpush3.bf16.msra.mxu0 %v3394_v43  ;;  %2763 = vmatprep.mubr.f32.mxu1 %v4179_v42  ;;  %v3406_v43 = vpack.c.bf16 %v2366_v24, %v2365_v23  ;;  %v4353_v23 = vsel %vm731_vm1, %v1883_v47, %v1884_v58  ;;  %v2369_v24 = vld [vmem:[%s4944_s2 + $0x2f0] sm:$0xff] }
  0x46   : > { %2987 = vmatprep.mubr.f32.mxu0 %v4207_v53  ;;  %3271 = vmatprep.subr.bf16.mxu1 %v3270_v54  ;;  %v4335_v62 = vsel %vm367_vm0, %v403_v35, %v404_v36  ;;  %4950 = vst [vmem:[#allocation5_spill] sm:$0xff] %v4353_v23  ;;  %v4364_v35 = vsel %vm367_vm0, %v404_v36, %v406_v60  ;;  %v738_v36 = vrot.slane %v4015_v32, 2  ;;  %v2307_v60 = vld [vmem:[%s4944_s2 + $0x100] sm:$0xff] }
  0x47   : > { %2764 = vmatmul.mubr.f32.gmra.mrb[6].mxu1 %v4201_v50  ;;  %3399 = vmatprep.subr.bf16.mxu0 %v3398_v55 }
  0x48   : > { %2988 = vmatmul.mubr.f32.gmra.mrb[6].mxu0 %v4246_v7  ;;  %3273 = vmatpush3.bf16.msra.mxu1 %v3270_v54  ;;  %v4321_v54 = vld [vmem:[%s4287_s14] sm:$0xff] }
  0x49   : > { %3401 = vmatpush3.bf16.msra.mxu0 %v3398_v55  ;;  %2766 = vmatprep.mubr.f32.mxu1 %v4207_v53  ;;  %v4324_v55 = vld [vmem:[%s4287_s14 + $0x8] sm:$0xff]  ;;  %s263_s14 = sand.u32 1, %s3806_s16  }
  0x4a   : > { %2990 = vmatprep.mubr.f32.mxu0 %v4259_v12  ;;  %3275 = vmatprep.subr.bf16.mxu1 %v3274_v9  ;;  %v1148_v16 = vrot.slane %v4324_v55, 1  ;;  %s2285_s24 = sshll.u32 %s263_s14, 7  ;;  %s4890_s30 = scalar_lea.sflag [#allocation3], %s263_s14 }
  0x4b   : > { %2767 = vmatmul.mubr.f32.gmra.mrb[8].mxu1 %v4246_v7  ;;  %3403 = vmatprep.subr.bf16.mxu0 %v3402_v13  ;;  %s4839_s10 = scalar_lea.vmem [#allocation2], %s2285_s24  ;;  %s3742_s24 = scalar_lea.vmem %s3741_s13, 4096 }
  0x4c   : > { %2991 = vmatmul.mubr.f32.gmra.mrb[8].mxu0 %v4281_v25  ;;  %3277 = vmatpush3.bf16.msra.mxu1 %v3274_v9  ;;  %v4341_v9 = vsel %vm367_vm0, %v1698_v46, %v1699_v57  ;;  %v1886_v46 = vrot.slane %v326_v44, 2  ;;  %v740_v44 = vrot.slane %v4078_v61, 2  ;;  %v743_v61 = vrot.slane %v4091_v2, 2  ;;  %s2172_s9 = sshll.u32 %s4839_s10, 4  ;;  %s4885_s9 = int_to_ptr.vmem [resolvable:$true] %s2172_s9 }
  0x4d   : > { %3405 = vmatpush3.bf16.msra.mxu0 %v3402_v13  ;;  %2769 = vmatprep.mubr.f32.mxu1 %v4259_v12  ;;  %v1147_v13 = vrot.slane %v4321_v54, 1  ;;  %s3736_s8 = scalar_lea.vmem %s4885_s9, 2048  ;;  %p3743_p6 = scmp.lt.s32.totalorder %s4885_s9, %s3741_s13 }
  0x4e   : > { %2993 = vmatprep.mubr.f32.mxu0 %v4303_v41  ;;  %3279 = vmatprep.subr.bf16.mxu1 %v3278_v33  ;;  %p3737_p2 = scmp.ne.s32.totalorder %s4885_s9, %s3736_s8  ;;  %p3744_p7 = scmp.lt.s32.totalorder %s3742_s24, %s3736_s8 }
  0x4f   : > { %2770 = vmatmul.mubr.f32.gmra.mrb[10].mxu1 %v4281_v25  ;;  %3407 = vmatprep.subr.bf16.mxu0 %v3406_v43  ;;  %v4371_v47 = vsel %vm367_vm0, %v1147_v13, %v1148_v16  ;;  %v2371_v13 = vld [vmem:[%s4944_s2 + $0x300] sm:$0xff] }
  0x50   : > { %2994 = vmatmul.mubr.f32.gmra.mrb[10].mxu0 %v4330_v59  ;;  %3281 = vmatpush3.bf16.msra.mxu1 %v3278_v33  ;;  %v3286_v33 = vpack.c.bf16 %v342_v18, %v341_v17  ;;  %v2308_v17 = vld [vmem:[%s4944_s2 + $0x108] sm:$0xff]  ;;  %p3738_p4 = pnand %p3737_p2, %p3911_p3  ;;  %p3745_p9 = por %p3744_p7, %p3743_p6 }
  0x51   : > { %3409 = vmatpush3.bf16.msra.mxu0 %v3406_v43  ;;  %2772 = vmatprep.mubr.f32.mxu1 %v4303_v41  ;;  %v3414_v43 = vpack.c.bf16 %v2370_v30, %v2369_v24  ;;  %v2372_v18 = vld [vmem:[%s4944_s2 + $0x308] sm:$0xff]  ;;  %v4389_v24 = vsel %vm367_vm0, %v1699_v57, %v1701_v45  ;;  %v4392_v30 = vsel %vm731_vm1, %v1884_v58, %v1886_v46  ;;  %v742_v45 = vrot.slane %v4088_v1, 2  ;;  %v2374_v46 = vld [vmem:[%s4944_s2 + $0x318] sm:$0xff] }
  0x52   : > { %2996 = vmatprep.mubr.f32.mxu0 %v4335_v62  ;;  %3283 = vmatprep.subr.bf16.mxu1 %v3282_v3  ;;  %4951 = vst [vmem:[#allocation6_spill] sm:$0xff] %v4392_v30  ;;  %v3290_v23 = vpack.c.bf16 %v2308_v17, %v2307_v60  ;;  %v4402_v57 = vsel %vm731_vm1, %v737_v52, %v738_v36  ;;  %v745_v60 = vrot.slane %v4096_v6, 2  ;;  %v2312_v6 = vld [vmem:[%s4944_s2 + $0x128] sm:$0xff]  ;;  %v1333_v30 = vrot.slane %v4324_v55, 2  ;;  %p3739_p5 = pneg %p3738_p4 }
  0x53   : > { %2773 = vmatmul.mubr.f32.gmra.mrb[12].mxu1 %v4330_v59  ;;  %3411 = vmatprep.subr.bf16.mxu0 %v3410_v10  ;;  %v3418_v58 = vpack.c.bf16 %v2372_v18, %v2371_v13  ;;  %v4421_v52 = vsel %vm731_vm1, %v738_v36, %v740_v44  ;;  %v4427_v17 = vsel %vm731_vm1, %v742_v45, %v743_v61  ;;  %v2311_v36 = vld [vmem:[%s4944_s2 + $0x120] sm:$0xff]  ;;  %v2376_v18 = vld [vmem:[%s4944_s2 + $0x328] sm:$0xff]  ;;  %v750_v45 = vrot.slane %v4135_v20, 2  ;;  %v2314_v20 = vld [vmem:[%s4944_s2 + $0x138] sm:$0xff] }
  0x54   : > { %2997 = vmatmul.mubr.f32.gmra.mrb[12].mxu0 %v4364_v35  ;;  %3285 = vmatpush3.bf16.msra.mxu1 %v3282_v3  ;;  %v4397_v3 = vsel %vm367_vm0, %v1148_v16, %v1150_v37  ;;  %v2310_v16 = vld [vmem:[%s4944_s2 + $0x118] sm:$0xff]  ;;  %v2373_v37 = vld [vmem:[%s4944_s2 + $0x310] sm:$0xff]  ;;  %v4446_v44 = vsel %vm731_vm1, %v743_v61, %v745_v60  ;;  %v755_v60 = vrot.slane %v4175_v40, 2  ;;  %v2316_v40 = vld [vmem:[%s4944_s2 + $0x148] sm:$0xff]  ;;  %p3746_p10 = pnand %p3745_p9, %p3739_p5 }
  0x55   : > { %3413 = vmatpush3.bf16.msra.mxu0 %v3410_v10  ;;  %2775 = vmatprep.mubr.f32.mxu1 %v4335_v62  ;;  %v2309_v10 = vld [vmem:[%s4944_s2 + $0x110] sm:$0xff]  ;;  %v3422_v13 = vpack.c.bf16 %v2374_v46, %v2373_v37  ;;  %v2378_v37 = vld [vmem:[%s4944_s2 + $0x338] sm:$0xff] }
  0x56   : > { %2999 = vmatprep.mubr.f32.mxu0 %v4371_v47  ;;  %3287 = vmatprep.subr.bf16.mxu1 %v3286_v33  ;;  %v2313_v61 = vld [vmem:[%s4944_s2 + $0x130] sm:$0xff] }
  0x57   : > { %2776 = vmatmul.mubr.f32.gmra.mrb[14].mxu1 %v4364_v35  ;;  %3415 = vmatprep.subr.bf16.mxu0 %v3414_v43 }
  0x58   : > { %3000 = vmatmul.mubr.f32.gmra.mrb[14].mxu0 %v4397_v3  ;;  %3289 = vmatpush3.bf16.msra.mxu1 %v3286_v33  ;;  %v3294_v33 = vpack.c.bf16 %v2310_v16, %v2309_v10 }
  0x59   : > { %3417 = vmatpush3.bf16.msra.mxu0 %v3414_v43  ;;  %2810 = vmatprep.mubr.f32.mxu1 %v4005_v28  ;;  %v747_v43 = vrot.slane %v4122_v14, 2  ;;  %v748_v28 = vrot.slane %v4125_v15, 2 }
  0x5a   : > { %3034 = vmatprep.mubr.f32.mxu0 %v4402_v57  ;;  %3291 = vmatprep.subr.bf16.mxu1 %v3290_v23 }
  0x5b   : > { %2811 = vmatmul.mubr.f32.vlgmr.msra.gmra.mrb[0].mxu1 %v4008_v29  ;;  %3419 = vmatprep.subr.bf16.mxu0 %v3418_v58  ;;  %v2375_v29 = vld [vmem:[%s4944_s2 + $0x320] sm:$0xff]  ;;  %v4452_v10 = vsel %vm731_vm1, %v747_v43, %v748_v28  ;;  %v4471_v46 = vsel %vm731_vm1, %v748_v28, %v750_v45 }
  0x5c   : > { %3035 = vmatmul.mubr.f32.vlgmr.msra.gmra.mrb[0].mxu0 %v4421_v52  ;;  %3293 = vmatpush3.bf16.msra.mxu1 %v3290_v23  ;;  %v3298_v23 = vpack.c.bf16 %v2312_v6, %v2311_v36  ;;  %v3426_v16 = vpack.c.bf16 %v2376_v18, %v2375_v29  ;;  %v758_v6 = vrot.slane %v4197_v49, 2  ;;  %v2315_v28 = vld [vmem:[%s4944_s2 + $0x140] sm:$0xff]  ;;  %v2380_v18 = vld [vmem:[%s4944_s2 + $0x348] sm:$0xff] }
  0x5d   : > { %3421 = vmatpush3.bf16.msra.mxu0 %v3418_v58  ;;  %2813 = vmatprep.mubr.f32.mxu1 %v4012_v31  ;;  %v752_v58 = vrot.slane %v4146_v26, 2  ;;  %v753_v31 = vrot.slane %v4149_v27, 2  ;;  %v2379_v29 = vld [vmem:[%s4944_s2 + $0x340] sm:$0xff] }
  0x5e   : > { %3037 = vmatprep.mubr.f32.mxu0 %v4427_v17  ;;  %3295 = vmatprep.subr.bf16.mxu1 %v3294_v33 }
  0x5f   : > { %2814 = vmatmul.mubr.f32.gmra.mrb[2].mxu1 %v4015_v32  ;;  %3423 = vmatprep.subr.bf16.mxu0 %v3422_v13  ;;  %v2377_v32 = vld [vmem:[%s4944_s2 + $0x330] sm:$0xff]  ;;  %v4477_v43 = vsel %vm731_vm1, %v752_v58, %v753_v31  ;;  %v4496_v45 = vsel %vm731_vm1, %v753_v31, %v755_v60  ;;  %v760_v58 = vrot.slane %v4210_v56, 2  ;;  %v2318_v56 = vld [vmem:[%s4944_s2 + $0x158] sm:$0xff] }
  0x60   : > { %3038 = vmatmul.mubr.f32.gmra.mrb[2].mxu0 %v4446_v44  ;;  %3297 = vmatpush3.bf16.msra.mxu1 %v3294_v33  ;;  %v3302_v33 = vpack.c.bf16 %v2314_v20, %v2313_v61  ;;  %v3430_v36 = vpack.c.bf16 %v2378_v37, %v2377_v32  ;;  %v3434_v20 = vpack.c.bf16 %v2380_v18, %v2379_v29  ;;  %v763_v32 = vrot.slane %v4242_v5, 2  ;;  %v2317_v31 = vld [vmem:[%s4944_s2 + $0x150] sm:$0xff]  ;;  %v2382_v60 = vld [vmem:[%s4944_s2 + $0x358] sm:$0xff] }
  0x61   : > { %3425 = vmatpush3.bf16.msra.mxu0 %v3422_v13  ;;  %2816 = vmatprep.mubr.f32.mxu1 %v4088_v1  ;;  %v757_v13 = vrot.slane %v4194_v48, 2  ;;  %v2381_v37 = vld [vmem:[%s4944_s2 + $0x350] sm:$0xff]  ;;  %v768_v18 = vrot.slane %v4270_v22, 2 }
  0x62   : > { %3040 = vmatprep.mubr.f32.mxu0 %v4452_v10  ;;  %3299 = vmatprep.subr.bf16.mxu1 %v3298_v23  ;;  %v3438_v29 = vpack.c.bf16 %v2382_v60, %v2381_v37 }
  0x63   : > { %2817 = vmatmul.mubr.f32.gmra.mrb[4].mxu1 %v4091_v2  ;;  %3427 = vmatprep.subr.bf16.mxu0 %v3426_v16  ;;  %v4502_v61 = vsel %vm731_vm1, %v757_v13, %v758_v6  ;;  %v4521_v13 = vsel %vm731_vm1, %v758_v6, %v760_v58  ;;  %v2319_v6 = vld [vmem:[%s4944_s2 + $0x160] sm:$0xff] }
  0x64   : > { %3041 = vmatmul.mubr.f32.gmra.mrb[4].mxu0 %v4471_v46  ;;  %3301 = vmatpush3.bf16.msra.mxu1 %v3298_v23  ;;  %v3306_v23 = vpack.c.bf16 %v2316_v40, %v2315_v28  ;;  %v765_v28 = vrot.slane %v4254_v11, 2  ;;  %v2320_v11 = vld [vmem:[%s4944_s2 + $0x168] sm:$0xff]  ;;  %v2383_v58 = vld [vmem:[%s4944_s2 + $0x360] sm:$0xff] }
  0x65   : > { %3429 = vmatpush3.bf16.msra.mxu0 %v3426_v16  ;;  %2819 = vmatprep.mubr.f32.mxu1 %v4122_v14  ;;  %v762_v16 = vrot.slane %v4239_v4, 2 }
  0x66   : > { %3043 = vmatprep.mubr.f32.mxu0 %v4477_v43  ;;  %3303 = vmatprep.subr.bf16.mxu1 %v3302_v33 }
  0x67   : > { %2820 = vmatmul.mubr.f32.gmra.mrb[6].mxu1 %v4125_v15  ;;  %3431 = vmatprep.subr.bf16.mxu0 %v3430_v36  ;;  %v4527_v40 = vsel %vm731_vm1, %v762_v16, %v763_v32  ;;  %v2384_v16 = vld [vmem:[%s4944_s2 + $0x368] sm:$0xff] }
  0x68   : > { %3044 = vmatmul.mubr.f32.gmra.mrb[6].mxu0 %v4496_v45  ;;  %3305 = vmatpush3.bf16.msra.mxu1 %v3302_v33  ;;  %v3310_v33 = vpack.c.bf16 %v2318_v56, %v2317_v31  ;;  %v4546_v31 = vsel %vm731_vm1, %v763_v32, %v765_v28  ;;  %v770_v56 = vrot.slane %v4296_v38, 2  ;;  %v3442_v60 = vpack.c.bf16 %v2384_v16, %v2383_v58  ;;  %v2321_v32 = vld [vmem:[%s4944_s2 + $0x170] sm:$0xff]  ;;  %v2322_v38 = vld [vmem:[%s4944_s2 + $0x178] sm:$0xff] }
  0x69   : > { %3433 = vmatpush3.bf16.msra.mxu0 %v3430_v36  ;;  %2822 = vmatprep.mubr.f32.mxu1 %v4146_v26  ;;  %v767_v36 = vrot.slane %v4267_v19, 2  ;;  %v2385_v28 = vld [vmem:[%s4944_s2 + $0x370] sm:$0xff] }
  0x6a   : > { %3046 = vmatprep.mubr.f32.mxu0 %v4502_v61  ;;  %3307 = vmatprep.subr.bf16.mxu1 %v3306_v23 }
  0x6b   : > { %2823 = vmatmul.mubr.f32.gmra.mrb[8].mxu1 %v4149_v27  ;;  %3435 = vmatprep.subr.bf16.mxu0 %v3434_v20  ;;  %v4552_v37 = vsel %vm731_vm1, %v767_v36, %v768_v18  ;;  %v2386_v36 = vld [vmem:[%s4944_s2 + $0x378] sm:$0xff] }
  0x6c   : > { %3047 = vmatmul.mubr.f32.gmra.mrb[8].mxu0 %v4521_v13  ;;  %3309 = vmatpush3.bf16.msra.mxu1 %v3306_v23  ;;  %v3314_v23 = vpack.c.bf16 %v2320_v11, %v2319_v6  ;;  %v4571_v6 = vsel %vm731_vm1, %v768_v18, %v770_v56  ;;  %v1335_v11 = vrot.slane %v4338_v8, 2  ;;  %v3446_v16 = vpack.c.bf16 %v2386_v36, %v2385_v28  ;;  %v2324_v18 = vld [vmem:[%s4944_s2 + $0x188] sm:$0xff]  ;;  %v2387_v8 = vld [vmem:[%s4944_s2 + $0x380] sm:$0xff]  ;;  %v2390_v28 = vld [vmem:[%s4944_s2 + $0x398] sm:$0xff] }
  0x6d   : > { %3437 = vmatpush3.bf16.msra.mxu0 %v3434_v20  ;;  %2825 = vmatprep.mubr.f32.mxu1 %v4194_v48  ;;  %v1332_v20 = vrot.slane %v4321_v54, 2  ;;  %v2388_v56 = vld [vmem:[%s4944_s2 + $0x388] sm:$0xff] }
  0x6e   : > { %3049 = vmatprep.mubr.f32.mxu0 %v4527_v40  ;;  %3311 = vmatprep.subr.bf16.mxu1 %v3310_v33 }
  0x6f   : > { %2826 = vmatmul.mubr.f32.gmra.mrb[10].mxu1 %v4197_v49  ;;  %3439 = vmatprep.subr.bf16.mxu0 %v3438_v29  ;;  %v4577_v58 = vsel %vm731_vm1, %v1332_v20, %v1333_v30  ;;  %v4594_v20 = vsel %vm731_vm1, %v1333_v30, %v1335_v11  ;;  %v2389_v30 = vld [vmem:[%s4944_s2 + $0x390] sm:$0xff] }
  0x70   : > { %3050 = vmatmul.mubr.f32.gmra.mrb[10].mxu0 %v4546_v31  ;;  %3313 = vmatpush3.bf16.msra.mxu1 %v3310_v33  ;;  %v3318_v33 = vpack.c.bf16 %v2322_v38, %v2321_v32  ;;  %v2325_v38 = vld [vmem:[%s4944_s2 + $0x190] sm:$0xff]  ;;  %v3454_v11 = vpack.c.bf16 %v2390_v28, %v2389_v30  ;;  %v2395_v30 = vld [vmem:[%s4944_s2 + $0x3c0] sm:$0xff]  ;;  %v2396_v28 = vld [vmem:[%s4944_s2 + $0x3c8] sm:$0xff] }
  0x71   : > { %3441 = vmatpush3.bf16.msra.mxu0 %v3438_v29  ;;  %2828 = vmatprep.mubr.f32.mxu1 %v4239_v4  ;;  %v2323_v29 = vld [vmem:[%s4944_s2 + $0x180] sm:$0xff] }
  0x72   : > { %3052 = vmatprep.mubr.f32.mxu0 %v4552_v37  ;;  %3315 = vmatprep.subr.bf16.mxu1 %v3314_v23  ;;  %v3322_v32 = vpack.c.bf16 %v2324_v18, %v2323_v29  ;;  %v2328_v29 = vld [vmem:[%s4944_s2 + $0x1a8] sm:$0xff] }
  0x73   : > { %2829 = vmatmul.mubr.f32.gmra.mrb[12].mxu1 %v4242_v5  ;;  %3443 = vmatprep.subr.bf16.mxu0 %v3442_v60 }
  0x74   : > { %3053 = vmatmul.mubr.f32.gmra.mrb[12].mxu0 %v4571_v6  ;;  %3317 = vmatpush3.bf16.msra.mxu1 %v3314_v23  ;;  %v3450_v23 = vpack.c.bf16 %v2388_v56, %v2387_v8  ;;  %v2329_v8 = vld [vmem:[%s4944_s2 + $0x1b0] sm:$0xff]  ;;  %v2330_v56 = vld [vmem:[%s4944_s2 + $0x1b8] sm:$0xff] }
  0x75   : > { %3445 = vmatpush3.bf16.msra.mxu0 %v3442_v60  ;;  %2831 = vmatprep.mubr.f32.mxu1 %v4267_v19  ;;  %v2326_v60 = vld [vmem:[%s4944_s2 + $0x198] sm:$0xff] }
  0x76   : > { %3055 = vmatprep.mubr.f32.mxu0 %v4577_v58  ;;  %3319 = vmatprep.subr.bf16.mxu1 %v3318_v33  ;;  %v3326_v36 = vpack.c.bf16 %v2326_v60, %v2325_v38  ;;  %v2331_v38 = vld [vmem:[%s4944_s2 + $0x1c0] sm:$0xff]  ;;  %v2332_v60 = vld [vmem:[%s4944_s2 + $0x1c8] sm:$0xff] }
  0x77   : > { %2832 = vmatmul.mubr.f32.gmra.mrb[14].mxu1 %v4270_v22  ;;  %3447 = vmatprep.subr.bf16.mxu0 %v3446_v16 }
  0x78   : > { %3056 = vmatmul.mubr.f32.gmra.mrb[14].mxu0 %v4594_v20  ;;  %3321 = vmatpush3.bf16.msra.mxu1 %v3318_v33  ;;  %v2327_v33 = vld [vmem:[%s4944_s2 + $0x1a0] sm:$0xff] }
  0x79   : > { %3449 = vmatpush3.bf16.msra.mxu0 %v3446_v16  ;;  %2866 = vmatprep.mubr.f32.mxu1 %v4229_v63  ;;  %v2391_v63 = vld [vmem:[%s4944_s2 + $0x3a0] sm:$0xff]  ;;  %v3330_v16 = vpack.c.bf16 %v2328_v29, %v2327_v33  ;;  %v2333_v33 = vld [vmem:[%s4944_s2 + $0x1d0] sm:$0xff]  ;;  %v2334_v29 = vld [vmem:[%s4944_s2 + $0x1d8] sm:$0xff] }
  0x7a   : > { %3090 = vmatprep.mubr.f32.mxu0 %v4088_v1  ;;  %3323 = vmatprep.subr.bf16.mxu1 %v3322_v32 }
  0x7b   : > { %2867 = vmatmul.mubr.f32.vlgmr.msra.gmra.mrb[0].mxu1 %v4232_v0  ;;  %3451 = vmatprep.subr.bf16.mxu0 %v3450_v23  ;;  %v2392_v0 = vld [vmem:[%s4944_s2 + $0x3a8] sm:$0xff] }
  0x7c   : > { %3091 = vmatmul.mubr.f32.vlgmr.msra.gmra.mrb[0].mxu0 %v4091_v2  ;;  %3325 = vmatpush3.bf16.msra.mxu1 %v3322_v32  ;;  %v3458_v18 = vpack.c.bf16 %v2392_v0, %v2391_v63  ;;  %v3334_v32 = vpack.c.bf16 %v2330_v56, %v2329_v8  ;;  %v2397_v63 = vld [vmem:[%s4944_s2 + $0x3d0] sm:$0xff]  ;;  %v2398_v0 = vld [vmem:[%s4944_s2 + $0x3d8] sm:$0xff]  ;;  %v2335_v8 = vld [vmem:[%s4944_s2 + $0x1e0] sm:$0xff] }
  0x7d   : > { %3453 = vmatpush3.bf16.msra.mxu0 %v3450_v23  ;;  %2869 = vmatprep.mubr.f32.mxu1 %v4402_v57  ;;  %v2393_v57 = vld [vmem:[%s4944_s2 + $0x3b0] sm:$0xff]  ;;  %v2336_v56 = vld [vmem:[%s4944_s2 + $0x1e8] sm:$0xff] }
  0x7e   : > { %3093 = vmatprep.mubr.f32.mxu0 %v4122_v14  ;;  %3327 = vmatprep.subr.bf16.mxu1 %v3326_v36 }
  0x7f   : > { %2870 = vmatmul.mubr.f32.gmra.mrb[2].mxu1 %v4421_v52  ;;  %3455 = vmatprep.subr.bf16.mxu0 %v3454_v11  ;;  %v2394_v52 = vld [vmem:[%s4944_s2 + $0x3b8] sm:$0xff] }
  0x80   : > { %3094 = vmatmul.mubr.f32.gmra.mrb[2].mxu0 %v4125_v15  ;;  %3329 = vmatpush3.bf16.msra.mxu1 %v3326_v36  ;;  %v3462_v23 = vpack.c.bf16 %v2394_v52, %v2393_v57  ;;  %v3338_v36 = vpack.c.bf16 %v2332_v60, %v2331_v38  ;;  %v2399_v57 = vld [vmem:[%s4944_s2 + $0x3e0] sm:$0xff]  ;;  %v2400_v52 = vld [vmem:[%s4944_s2 + $0x3e8] sm:$0xff]  ;;  %v2337_v38 = vld [vmem:[%s4944_s2 + $0x1f0] sm:$0xff] }
  0x81   : > { %3457 = vmatpush3.bf16.msra.mxu0 %v3454_v11  ;;  %2872 = vmatprep.mubr.f32.mxu1 %v4427_v17  ;;  %v3466_v11 = vpack.c.bf16 %v2396_v28, %v2395_v30  ;;  %v2338_v60 = vld [vmem:[%s4944_s2 + $0x1f8] sm:$0xff]  ;;  %v2401_v30 = vld [vmem:[%s4944_s2 + $0x3f0] sm:$0xff] }
  0x82   : > { %3096 = vmatprep.mubr.f32.mxu0 %v4146_v26  ;;  %3331 = vmatprep.subr.bf16.mxu1 %v3330_v16  ;;  %v2402_v28 = vld [vmem:[%s4944_s2 + $0x3f8] sm:$0xff] }
  0x83   : > { %2873 = vmatmul.mubr.f32.gmra.mrb[4].mxu1 %v4446_v44  ;;  %3459 = vmatprep.subr.bf16.mxu0 %v3458_v18 }
  0x84   : > { %3097 = vmatmul.mubr.f32.gmra.mrb[4].mxu0 %v4149_v27  ;;  %3333 = vmatpush3.bf16.msra.mxu1 %v3330_v16  ;;  %v3342_v16 = vpack.c.bf16 %v2334_v29, %v2333_v33  ;;  %v2403_v33 = vld [vmem:[%s4944_s2 + $0x400] sm:$0xff]  ;;  %v2404_v29 = vld [vmem:[%s4944_s2 + $0x408] sm:$0xff] }
  0x85   : > { %3461 = vmatpush3.bf16.msra.mxu0 %v3458_v18  ;;  %2875 = vmatprep.mubr.f32.mxu1 %v4452_v10  ;;  %v3470_v18 = vpack.c.bf16 %v2398_v0, %v2397_v63  ;;  %v3482_v63 = vpack.c.bf16 %v2404_v29, %v2403_v33  ;;  %v2405_v0 = vld [vmem:[%s4944_s2 + $0x410] sm:$0xff] }
  0x86   : > { %3099 = vmatprep.mubr.f32.mxu0 %v4194_v48  ;;  %3335 = vmatprep.subr.bf16.mxu1 %v3334_v32 }
  0x87   : > { %2876 = vmatmul.mubr.f32.gmra.mrb[6].mxu1 %v4471_v46  ;;  %3463 = vmatprep.subr.bf16.mxu0 %v3462_v23 }
  0x88   : > { %3100 = vmatmul.mubr.f32.gmra.mrb[6].mxu0 %v4197_v49  ;;  %3337 = vmatpush3.bf16.msra.mxu1 %v3334_v32  ;;  %v3346_v32 = vpack.c.bf16 %v2336_v56, %v2335_v8  ;;  %v3735_v8 = vld [vmem:[%s3996_s5 + $0x20] sm:$0xff] }
  0x89   : > { %3465 = vmatpush3.bf16.msra.mxu0 %v3462_v23  ;;  %2878 = vmatprep.mubr.f32.mxu1 %v4477_v43  ;;  %v3474_v23 = vpack.c.bf16 %v2400_v52, %v2399_v57  ;;  %v2407_v56 = vld [vmem:[%s4944_s2 + $0x420] sm:$0xff]  ;;  %v2408_v57 = vld [vmem:[%s4944_s2 + $0x428] sm:$0xff]  ;;  %v2410_v52 = vld [vmem:[%s4944_s2 + $0x438] sm:$0xff] }
  0x8a   : > { %3102 = vmatprep.mubr.f32.mxu0 %v4239_v4  ;;  %3339 = vmatprep.subr.bf16.mxu1 %v3338_v36 }
  0x8b   : > { %2879 = vmatmul.mubr.f32.gmra.mrb[8].mxu1 %v4496_v45  ;;  %3467 = vmatprep.subr.bf16.mxu0 %v3466_v11 }
  0x8c   : > { %3103 = vmatmul.mubr.f32.gmra.mrb[8].mxu0 %v4242_v5  ;;  %3341 = vmatpush3.bf16.msra.mxu1 %v3338_v36  ;;  %v3350_v36 = vpack.c.bf16 %v2338_v60, %v2337_v38 }
  0x8d   : > { %3469 = vmatpush3.bf16.msra.mxu0 %v3466_v11  ;;  %2881 = vmatprep.mubr.f32.mxu1 %v4502_v61  ;;  %v3478_v11 = vpack.c.bf16 %v2402_v28, %v2401_v30  ;;  %v4831_v30 = vld [vmem:[%s4945_s3] ss:$0 sm:$0xff] }
  0x8e   : > { %3105 = vmatprep.mubr.f32.mxu0 %v4267_v19  ;;  %3343 = vmatprep.subr.bf16.mxu1 %v3342_v16 }
  0x8f   : > { %2882 = vmatmul.mubr.f32.gmra.mrb[10].mxu1 %v4521_v13  ;;  %3471 = vmatprep.subr.bf16.mxu0 %v3470_v18 }
  0x90   : > { %3106 = vmatmul.mubr.f32.gmra.mrb[10].mxu0 %v4270_v22  ;;  %3345 = vmatpush3.bf16.msra.mxu1 %v3342_v16  ;;  %v2406_v16 = vld [vmem:[%s4944_s2 + $0x418] sm:$0xff] }
  0x91   : > { %3473 = vmatpush3.bf16.msra.mxu0 %v3470_v18  ;;  %2884 = vmatprep.mubr.f32.mxu1 %v4527_v40  ;;  %v3734_v18 = vld [vmem:[%s3996_s5 + $0x18] sm:$0xff]  ;;  %s2423_s5 = sshll.u32 %s3818_s19, 5 }
  0x92   : > { %3108 = vmatprep.mubr.f32.mxu0 %v4321_v54  ;;  %3347 = vmatprep.subr.bf16.mxu1 %v3346_v32  ;;  %s2169_s18 = sadd.s32 %s2433_s23, %s2423_s5 }
  0x93   : > { %2885 = vmatmul.mubr.f32.gmra.mrb[12].mxu1 %v4546_v31  ;;  %3475 = vmatprep.subr.bf16.mxu0 %v3474_v23  ;;  %s2424_s19 = sshll.u32 %s2169_s18, 7 }
  0x94   : > { %3109 = vmatmul.mubr.f32.gmra.mrb[12].mxu0 %v4324_v55  ;;  %3349 = vmatpush3.bf16.msra.mxu1 %v3346_v32  ;;  %s4883_s11 = scalar_lea.hbm %s4946_s4, %s2424_s19 }
  0x95   : > { %3477 = vmatpush3.bf16.msra.mxu0 %v3474_v23  ;;  %2887 = vmatprep.mubr.f32.mxu1 %v4552_v37 }
  0x96   : > { %3111 = vmatprep.mubr.f32.mxu0 %v4299_v39  ;;  %3351 = vmatprep.subr.bf16.mxu1 %v3350_v36  ;;  %v3486_v39 = vpack.c.bf16 %v2406_v16, %v2405_v0 }
  0x97   : > { %2888 = vmatmul.mubr.f32.gmra.mrb[14].mxu1 %v4571_v6  ;;  %3479 = vmatprep.subr.bf16.mxu0 %v3478_v11 }
  0x98   : > { %3112 = vmatmul.mubr.f32.gmra.mrb[14].mxu0 %v4314_v51  ;;  %3353 = vmatpush3.bf16.msra.mxu1 %v3350_v36  ;;  %v2409_v51 = vld [vmem:[%s4944_s2 + $0x430] sm:$0xff] }
  0x99   : > { %3481 = vmatpush3.bf16.msra.mxu0 %v3478_v11  ;;  %2922 = vmatprep.mubr.f32.mxu1 %v3734_v18 }
  0x9a   : > { %3146 = vmatprep.mubr.f32.mxu0 %v4138_v21  ;;  %3483 = vmatprep.subr.bf16.mxu0 %v3482_v63  ;;  %v3490_v21 = vpack.c.bf16 %v2408_v57, %v2407_v56 }
  0x9b   : > { %2923 = vmatmul.mubr.f32.vlgmr.msra.gmra.mrb[0].mxu1 %v3735_v8  ;;  %3514 = vmatprep.subr.bf16.mxu1 %v3482_v63 }
  0x9c   : > { %3147 = vmatmul.mubr.f32.vlgmr.msra.gmra.mrb[0].mxu0 %v4165_v34  ;;  %3522 = vmatpush3.bf16.msra.mxu1 %v3482_v63  ;;  %v2412_v34 = vld [vmem:[%s4944_s2 + $0x448] sm:$0xff] }
  0x9d   : > { %3485 = vmatpush3.bf16.msra.mxu0 %v3482_v63  ;;  %2925 = vmatprep.mubr.f32.mxu1 %v4088_v1  ;;  %v3494_v1 = vpack.c.bf16 %v2410_v52, %v2409_v51 }
  0x9e   : > { %3149 = vmatprep.mubr.f32.mxu0 %v4179_v42  ;;  %3487 = vmatprep.subr.bf16.mxu0 %v3486_v39  ;;  %v2414_v42 = vld [vmem:[%s4944_s2 + $0x458] sm:$0xff] }
  0x9f   : > { %2926 = vmatmul.mubr.f32.gmra.mrb[2].mxu1 %v4091_v2  ;;  %3515 = vmatprep.subr.bf16.mxu1 %v3486_v39  ;;  %v2411_v2 = vld [vmem:[%s4944_s2 + $0x440] sm:$0xff] }
  0xa0   : > { %3150 = vmatmul.mubr.f32.gmra.mrb[2].mxu0 %v4201_v50  ;;  %3523 = vmatpush3.bf16.msra.mxu1 %v3486_v39  ;;  %v2416_v50 = vld [vmem:[%s4944_s2 + $0x468] sm:$0xff] }
  0xa1   : > { %3489 = vmatpush3.bf16.msra.mxu0 %v3486_v39  ;;  %2928 = vmatprep.mubr.f32.mxu1 %v4122_v14  ;;  %v3498_v14 = vpack.c.bf16 %v2412_v34, %v2411_v2 }
  0xa2   : > { %3152 = vmatprep.mubr.f32.mxu0 %v4207_v53  ;;  %3491 = vmatprep.subr.bf16.mxu0 %v3490_v21  ;;  %v2418_v53 = vld [vmem:[%s4944_s2 + $0x478] sm:$0xff] }
  0xa3   : > { %2929 = vmatmul.mubr.f32.gmra.mrb[4].mxu1 %v4125_v15  ;;  %3516 = vmatprep.subr.bf16.mxu1 %v3490_v21  ;;  %v2413_v15 = vld [vmem:[%s4944_s2 + $0x450] sm:$0xff] }
  0xa4   : > { %3153 = vmatmul.mubr.f32.gmra.mrb[4].mxu0 %v4246_v7  ;;  %3524 = vmatpush3.bf16.msra.mxu1 %v3490_v21  ;;  %v4953_v7 = vld [vmem:[#allocation6_spill] sm:$0xff] }
  0xa5   : > { %3493 = vmatpush3.bf16.msra.mxu0 %v3490_v21  ;;  %2931 = vmatprep.mubr.f32.mxu1 %v4146_v26  ;;  %v3502_v26 = vpack.c.bf16 %v2414_v42, %v2413_v15 }
  0xa6   : > { %3155 = vmatprep.mubr.f32.mxu0 %v4259_v12  ;;  %3495 = vmatprep.subr.bf16.mxu0 %v3494_v1 }
  0xa7   : > { %2932 = vmatmul.mubr.f32.gmra.mrb[6].mxu1 %v4149_v27  ;;  %3517 = vmatprep.subr.bf16.mxu1 %v3494_v1  ;;  %v2415_v27 = vld [vmem:[%s4944_s2 + $0x460] sm:$0xff] }
  0xa8   : > { %3156 = vmatmul.mubr.f32.gmra.mrb[6].mxu0 %v4281_v25  ;;  %3525 = vmatpush3.bf16.msra.mxu1 %v3494_v1 }
  0xa9   : > { %3497 = vmatpush3.bf16.msra.mxu0 %v3494_v1  ;;  %2934 = vmatprep.mubr.f32.mxu1 %v4194_v48  ;;  %v3506_v48 = vpack.c.bf16 %v2416_v50, %v2415_v27 }
  0xaa   : > { %3158 = vmatprep.mubr.f32.mxu0 %v4303_v41  ;;  %3499 = vmatprep.subr.bf16.mxu0 %v3498_v14 }
  0xab   : > { %2935 = vmatmul.mubr.f32.gmra.mrb[8].mxu1 %v4197_v49  ;;  %3518 = vmatprep.subr.bf16.mxu1 %v3498_v14  ;;  %v2417_v49 = vld [vmem:[%s4944_s2 + $0x470] sm:$0xff] }
  0xac   : > { %3159 = vmatmul.mubr.f32.gmra.mrb[8].mxu0 %v4330_v59  ;;  %3526 = vmatpush3.bf16.msra.mxu1 %v3498_v14 }
  0xad   : > { %3501 = vmatpush3.bf16.msra.mxu0 %v3498_v14  ;;  %2937 = vmatprep.mubr.f32.mxu1 %v4239_v4  ;;  %v3510_v4 = vpack.c.bf16 %v2418_v53, %v2417_v49 }
  0xae   : > { %3161 = vmatprep.mubr.f32.mxu0 %v4335_v62  ;;  %3503 = vmatprep.subr.bf16.mxu0 %v3502_v26 }
  0xaf   : > { %2938 = vmatmul.mubr.f32.gmra.mrb[10].mxu1 %v4242_v5  ;;  %3519 = vmatprep.subr.bf16.mxu1 %v3502_v26  ;;  %v4952_v5 = vld [vmem:[#allocation5_spill] sm:$0xff] }
  0xb0   : > { %3162 = vmatmul.mubr.f32.gmra.mrb[10].mxu0 %v4364_v35  ;;  %3527 = vmatpush3.bf16.msra.mxu1 %v3502_v26 }
  0xb1   : > { %3505 = vmatpush3.bf16.msra.mxu0 %v3502_v26  ;;  %2940 = vmatprep.mubr.f32.mxu1 %v4267_v19 }
  0xb2   : > { %3164 = vmatprep.mubr.f32.mxu0 %v4371_v47  ;;  %3507 = vmatprep.subr.bf16.mxu0 %v3506_v48 }
  0xb3   : > { %2941 = vmatmul.mubr.f32.gmra.mrb[12].mxu1 %v4270_v22  ;;  %3520 = vmatprep.subr.bf16.mxu1 %v3506_v48 }
  0xb4   : > { %3165 = vmatmul.mubr.f32.gmra.mrb[12].mxu0 %v4397_v3  ;;  %3528 = vmatpush3.bf16.msra.mxu1 %v3506_v48 }
  0xb5   : > { %3509 = vmatpush3.bf16.msra.mxu0 %v3506_v48  ;;  %2943 = vmatprep.mubr.f32.mxu1 %v4321_v54 }
  0xb6   : > { %3167 = vmatprep.mubr.f32.mxu0 %v4341_v9  ;;  %3511 = vmatprep.subr.bf16.mxu0 %v3510_v4 }
  0xb7   : > { %2944 = vmatmul.mubr.f32.gmra.mrb[14].mxu1 %v4324_v55  ;;  %3521 = vmatprep.subr.bf16.mxu1 %v3510_v4 }
  0xb8   : > { %3168 = vmatmul.mubr.f32.gmra.mrb[14].mxu0 %v4389_v24  ;;  %3529 = vmatpush3.bf16.msra.mxu1 %v3510_v4 }
  0xb9   : > { %3513 = vmatpush3.bf16.msra.mxu0 %v3510_v4  ;;  %3202 = vmatprep.mubr.f32.mxu0 %v4427_v17 }
  0xba   : > { %3214 = vmatprep.mubr.f32.mxu1 %v4527_v40 }
  0xbb   : > { %3215 = vmatmul.mubr.f32.vlgmr.msra.gmra.mrb[16].mxu1 %v4546_v31 }
  0xbc   : > { %3203 = vmatmul.mubr.f32.vlgmr.msra.gmra.mrb[0].mxu0 %v4446_v44  ;;  %3217 = vmatprep.mubr.f32.mxu1 %v4552_v37 }
  0xbd   : > { %3205 = vmatprep.mubr.f32.mxu0 %v4452_v10 }
  0xbf   : > { %3218 = vmatmul.mubr.f32.gmra.mrb[18].mxu1 %v4571_v6 }
  0xc0   : > { %3206 = vmatmul.mubr.f32.gmra.mrb[2].mxu0 %v4471_v46  ;;  %3220 = vmatprep.mubr.f32.mxu1 %v4577_v58 }
  0xc1   : > { %3208 = vmatprep.mubr.f32.mxu0 %v4477_v43 }
  0xc3   : > { %3221 = vmatmul.mubr.f32.gmra.mrb[20].mxu1 %v4594_v20 }
  0xc4   : > { %3209 = vmatmul.mubr.f32.gmra.mrb[4].mxu0 %v4496_v45  ;;  %3223 = vmatprep.mubr.f32.mxu1 %v4952_v5 }
  0xc5   : > { %3211 = vmatprep.mubr.f32.mxu0 %v4502_v61 }
  0xc7   : > { %3224 = vmatmul.mubr.f32.gmra.mrb[22].mxu1 %v4953_v7 }
  0xc8   : > { %3212 = vmatmul.mubr.f32.gmra.mrb[6].mxu0 %v4521_v13 }
 0x16e   : > { %v2924_v12 = vpop.f32.mrb[0].mxu1 }
 0x16f   : > { %v1049_v19 = vpop.f32.mrb[1].mxu1 }
 0x172   : > { %v2927_v22 = vpop.f32.mrb[2].mxu1 }
 0x173   : > { %v4811_v25 = vpop.f32.mrb[3].mxu1 }
 0x176   : > { %v4813_v41 = vpop.f32.mrb[4].mxu1 }
 0x177   : > { %v4815_v54 = vpop.f32.mrb[5].mxu1 }
 0x17a   : > { %v4817_v55 = vpop.f32.mrb[6].mxu1 }
 0x17b   : > { %v4819_v59 = vpop.f32.mrb[7].mxu1 }
 0x17e   : > { %v2936_v62 = vpop.f32.mrb[8].mxu1 }
 0x17f   : > { %v3160_v9 = vpop.f32.mrb[8].mxu0  ;;  %v1089_v35 = vpop.f32.mrb[9].mxu1 }
 0x180   : > { %v3538_v47 = vadd.f32 %v3160_v9, %v2936_v62  ;;  %v1828_v24 = vpop.f32.mrb[9].mxu0 }
 0x181   : > { %v3540_v3 = vadd.f32 %v1828_v24, %v1089_v35 }
 0x182   : > { %v2939_v17 = vpop.f32.mrb[10].mxu1 }
 0x183   : > { %v3163_v44 = vpop.f32.mrb[10].mxu0  ;;  %v1099_v10 = vpop.f32.mrb[11].mxu1 }
 0x184   : > { %v3542_v46 = vadd.f32 %v3163_v44, %v2939_v17  ;;  %v1838_v43 = vpop.f32.mrb[11].mxu0 }
 0x185   : > { %v3544_v45 = vadd.f32 %v1838_v43, %v1099_v10 }
 0x186   : > { %v2942_v61 = vpop.f32.mrb[12].mxu1 }
 0x187   : > { %v3166_v13 = vpop.f32.mrb[12].mxu0  ;;  %v1109_v40 = vpop.f32.mrb[13].mxu1 }
 0x188   : > { %v3546_v31 = vadd.f32 %v3166_v13, %v2942_v61  ;;  %v1848_v37 = vpop.f32.mrb[13].mxu0 }
 0x189   : > { %v4821_v6 = vadd.f32 %v1848_v37, %v1109_v40 }
 0x18a   : > { %v2945_v58 = vpop.f32.mrb[14].mxu1 }
 0x18b   : > { %v3169_v20 = vpop.f32.mrb[14].mxu0  ;;  %v1119_v32 = vpop.f32.mrb[15].mxu1 }
 0x18c   : > { %v4823_v23 = vadd.f32 %v3169_v20, %v2945_v58  ;;  %v1858_v38 = vpop.f32.mrb[15].mxu0 }
 0x18d   : > { %v4825_v60 = vadd.f32 %v1858_v38, %v1119_v32 }
 0x18e   : > { %v3216_v28 = vpop.f32.mrb[16].mxu1 }
 0x18f   : > { %v3204_v36 = vpop.f32.mrb[0].mxu0  ;;  %v3539_v11 = vadd.f32 %v3538_v47, %v3216_v28  ;;  %v2013_v33 = vpop.f32.mrb[17].mxu1 }
 0x190   : > { %v3530_v29 = vadd.f32 %v3204_v36, %v2924_v12  ;;  %v1973_v63 = vpop.f32.mrb[1].mxu0  ;;  %v3541_v0 = vadd.f32 %v3540_v3, %v2013_v33 }
 0x191   : > { %v2084_v16 = vadd.f32 %v3539_v11, %v4831_v30  ;;  %v3531_v18 = vadd.f32 %v1973_v63, %v1049_v19 }
 0x192   : > { %v2076_v39 = vadd.f32 %v3530_v29, %v4831_v30  ;;  %v2083_v8 = vadd.f32 %v3541_v0, %v4831_v30  ;;  %v3219_v56 = vpop.f32.mrb[18].mxu1 }
 0x193   : > { %vm2100_vm2 = vcmp.gt.f32.partialorder %v2084_v16, 0.0  ;;  %v2116_v57 = vmul.f32 0.1, %v2084_v16  ;;  %v2075_v21 = vadd.f32 %v3531_v18, %v4831_v30  ;;  %v3207_v51 = vpop.f32.mrb[2].mxu0  ;;  %v3543_v52 = vadd.f32 %v3542_v46, %v3219_v56  ;;  %v2023_v1 = vpop.f32.mrb[19].mxu1 }
 0x194   : > { %vm2092_vm3 = vcmp.gt.f32.partialorder %v2076_v39, 0.0  ;;  %v2108_v2 = vmul.f32 0.1, %v2076_v39  ;;  %vm2099_vm4 = vcmp.gt.f32.partialorder %v2083_v8, 0.0  ;;  %v2115_v34 = vmul.f32 0.1, %v2083_v8 }
 0x195   : > { %v2132_v14 = vsel %vm2100_vm2, %v2084_v16, %v2116_v57  ;;  %vm2091_vm5 = vcmp.gt.f32.partialorder %v2075_v21, 0.0  ;;  %v2107_v15 = vmul.f32 0.1, %v2075_v21  ;;  %v3532_v42 = vadd.f32 %v3207_v51, %v2927_v22  ;;  %v1983_v26 = vpop.f32.mrb[3].mxu0 }
 0x196   : > { %v2124_v27 = vsel %vm2092_vm3, %v2076_v39, %v2108_v2  ;;  %2148 = vst [vmem:[%s4839_s10 + $0x48] sm:$0xff] %v2132_v14  ;;  %v2131_v50 = vsel %vm2099_vm4, %v2083_v8, %v2115_v34  ;;  %v2086_v48 = vadd.f32 %v3543_v52, %v4831_v30  ;;  %v3533_v49 = vadd.f32 %v1983_v26, %v4811_v25  ;;  %v3222_v53 = vpop.f32.mrb[20].mxu1 }
 0x197   : > { %2140 = vst [vmem:[%s4839_s10 + $0x8] sm:$0xff] %v2124_v27  ;;  %v2123_v4 = vsel %vm2091_vm5, %v2075_v21, %v2107_v15  ;;  %2147 = vst [vmem:[%s4839_s10 + $0x40] sm:$0xff] %v2131_v50  ;;  %v2078_v5 = vadd.f32 %v3532_v42, %v4831_v30  ;;  %v3545_v7 = vadd.f32 %v3544_v45, %v2023_v1  ;;  %v3210_v12 = vpop.f32.mrb[4].mxu0  ;;  %v2033_v22 = vpop.f32.mrb[21].mxu1 }
 0x198   : > { %v3547_v19 = vadd.f32 %v3546_v31, %v3222_v53  ;;  %2139 = vst [vmem:[%s4839_s10] sm:$0xff] %v2123_v4  ;;  %vm2102_vm6 = vcmp.gt.f32.partialorder %v2086_v48, 0.0  ;;  %v2118_v62 = vmul.f32 0.1, %v2086_v48  ;;  %v2077_v9 = vadd.f32 %v3533_v49, %v4831_v30  ;;  %v1993_v47 = vpop.f32.mrb[5].mxu0 }
 0x199   : > { %v3534_v35 = vadd.f32 %v3210_v12, %v4813_v41  ;;  %vm2094_vm7 = vcmp.gt.f32.partialorder %v2078_v5, 0.0  ;;  %v2110_v25 = vmul.f32 0.1, %v2078_v5  ;;  %v2085_v24 = vadd.f32 %v3545_v7, %v4831_v30 }
 0x19a   : > { %v2088_v3 = vadd.f32 %v3547_v19, %v4831_v30  ;;  %v2134_v17 = vsel %vm2102_vm6, %v2086_v48, %v2118_v62  ;;  %vm2093_vm8 = vcmp.gt.f32.partialorder %v2077_v9, 0.0  ;;  %v2109_v44 = vmul.f32 0.1, %v2077_v9  ;;  %v3225_v46 = vpop.f32.mrb[22].mxu1 }
 0x19b   : > { %v2080_v10 = vadd.f32 %v3534_v35, %v4831_v30  ;;  %v2126_v43 = vsel %vm2094_vm7, %v2078_v5, %v2110_v25  ;;  %2150 = vst [vmem:[%s4839_s10 + $0x58] sm:$0xff] %v2134_v17  ;;  %vm2101_vm9 = vcmp.gt.f32.partialorder %v2085_v24, 0.0  ;;  %v2117_v41 = vmul.f32 0.1, %v2085_v24  ;;  %v3213_v45 = vpop.f32.mrb[6].mxu0  ;;  %v2043_v61 = vpop.f32.mrb[23].mxu1 }
 0x19c   : > { %vm2104_vm10 = vcmp.gt.f32.partialorder %v2088_v3, 0.0  ;;  %2142 = vst [vmem:[%s4839_s10 + $0x18] sm:$0xff] %v2126_v43  ;;  %v2125_v13 = vsel %vm2093_vm8, %v2077_v9, %v2109_v44  ;;  %v2120_v31 = vmul.f32 0.1, %v2088_v3  ;;  %v2003_v37 = vpop.f32.mrb[7].mxu0  ;;  %v3535_v20 = vadd.f32 %v1993_v47, %v4815_v54 }
 0x19d   : > { %vm2096_vm11 = vcmp.gt.f32.partialorder %v2080_v10, 0.0  ;;  %v2112_v40 = vmul.f32 0.1, %v2080_v10  ;;  %2141 = vst [vmem:[%s4839_s10 + $0x10] sm:$0xff] %v2125_v13  ;;  %v2133_v58 = vsel %vm2101_vm9, %v2085_v24, %v2117_v41  ;;  %v3549_v32 = vadd.f32 %v4821_v6, %v2033_v22 }
 0x19e   : > { %v3536_v38 = vadd.f32 %v3213_v45, %v4817_v55  ;;  %2149 = vst [vmem:[%s4839_s10 + $0x50] sm:$0xff] %v2133_v58  ;;  %v2136_v36 = vsel %vm2104_vm10, %v2088_v3, %v2120_v31  ;;  %v3551_v11 = vadd.f32 %v4823_v23, %v3225_v46  ;;  %v3537_v33 = vadd.f32 %v2003_v37, %v4819_v59 }
 0x19f   : > { %v2128_v28 = vsel %vm2096_vm11, %v2080_v10, %v2112_v40  ;;  %2152 = vst [vmem:[%s4839_s10 + $0x68] sm:$0xff] %v2136_v36  ;;  %v2079_v29 = vadd.f32 %v3535_v20, %v4831_v30  ;;  %v2087_v54 = vadd.f32 %v3549_v32, %v4831_v30  ;;  %v3553_v55 = vadd.f32 %v4825_v60, %v2043_v61 }
 0x1a0   : > { %2144 = vst [vmem:[%s4839_s10 + $0x28] sm:$0xff] %v2128_v28  ;;  %v2082_v6 = vadd.f32 %v3536_v38, %v4831_v30  ;;  %v2090_v63 = vadd.f32 %v3551_v11, %v4831_v30  ;;  %v2081_v0 = vadd.f32 %v3537_v33, %v4831_v30 }
 0x1a1   : > { %vm2095_vm12 = vcmp.gt.f32.partialorder %v2079_v29, 0.0  ;;  %v2111_v59 = vmul.f32 0.1, %v2079_v29  ;;  %vm2103_vm13 = vcmp.gt.f32.partialorder %v2087_v54, 0.0  ;;  %v2119_v23 = vmul.f32 0.1, %v2087_v54 }
 0x1a2   : > { %vm2098_vm14 = vcmp.gt.f32.partialorder %v2082_v6, 0.0  ;;  %v2114_v16 = vmul.f32 0.1, %v2082_v6  ;;  %vm2106_vm15 = vcmp.gt.f32.partialorder %v2090_v63, 0.0  ;;  %v2122_v18 = vmul.f32 0.1, %v2090_v63 }
 0x1a3   : > { %v2127_v60 = vsel %vm2095_vm12, %v2079_v29, %v2111_v59  ;;  %v2135_v39 = vsel %vm2103_vm13, %v2087_v54, %v2119_v23  ;;  %vm2097_vm0 = vcmp.gt.f32.partialorder %v2081_v0, 0.0  ;;  %v2113_v8 = vmul.f32 0.1, %v2081_v0 }
 0x1a4   : > { %2143 = vst [vmem:[%s4839_s10 + $0x20] sm:$0xff] %v2127_v60  ;;  %2151 = vst [vmem:[%s4839_s10 + $0x60] sm:$0xff] %v2135_v39  ;;  %v2130_v56 = vsel %vm2098_vm14, %v2082_v6, %v2114_v16  ;;  %v2138_v57 = vsel %vm2106_vm15, %v2090_v63, %v2122_v18  ;;  %v2089_v21 = vadd.f32 %v3553_v55, %v4831_v30 }
 0x1a5   : > { %2146 = vst [vmem:[%s4839_s10 + $0x38] sm:$0xff] %v2130_v56  ;;  %2154 = vst [vmem:[%s4839_s10 + $0x78] sm:$0xff] %v2138_v57  ;;  %v2129_v51 = vsel %vm2097_vm0, %v2081_v0, %v2113_v8 }
 0x1a6   : > { %2145 = vst [vmem:[%s4839_s10 + $0x30] sm:$0xff] %v2129_v51  ;;  %vm2105_vm1 = vcmp.gt.f32.partialorder %v2089_v21, 0.0  ;;  %v2121_v52 = vmul.f32 0.1, %v2089_v21 }
 0x1a8   : > { %v2137_v1 = vsel %vm2105_vm1, %v2089_v21, %v2121_v52 }
 0x1a9   : > { %2153 = vst [vmem:[%s4839_s10 + $0x70] sm:$0xff] %v2137_v1 }
 0x1aa   : > { %3749 = shalt.err (!%p3746_p10)
}
 0x1ab   : > { %s3750_s14 = scalar_lea.hbm %s4883_s11, 2048  ;;  %s3754_s5 = scalar_lea.hbm %s4946_s4, 8192 }
 0x1ac   : > { %p3751_p11 = scmp.ne.s32.totalorder %s4883_s11, %s3750_s14  ;;  %p3755_p0 = scmp.lt.u32.totalorder %s4883_s11, %s4946_s4 }
 0x1ad   : > { %p3756_p1 = scmp.lt.u32.totalorder %s3754_s5, %s3750_s14  ;;  %p3758_p4 = scmp.lt.u32.totalorder %s3750_s14, %s4883_s11 }
 0x1ae   : > { %p3752_p12 = pnand %p3751_p11, %p3911_p3 }
 0x1af   : > { %p3757_p2 = por %p3756_p1, %p3755_p0 }
 0x1b0   : > { %p3753_p13 = pneg %p3752_p12 }
 0x1b1   : > { %p3759_p5 = por %p3758_p4, %p3757_p2 }
 0x1b3   : > { %p3760_p6 = pnand %p3759_p5, %p3753_p13 }
 0x1b5   : > { %3763 = shalt.err (!%p3760_p6)
}
 0x1b6   : > { %s3833_s27 = smov 128   ;;  %s3834_s6 = smov 8  }
 0x1b7   : > { %3661 = dma.vmem_to_hbm [thread:$0]  (%p3911_p3), %s4885_s9, 2048, %s4883_s11, %s4890_s30, %s3833_s27, %s3833_s27, %s3834_s6  }
 0x1b8 PF: > { %p3667_p7 = scmp.ge.s32.totalorder %s3830_s22, 2  ;;  %s2187_s8 = sand.u32 1, %s3802_s15  }
 0x1b9   : > { %s2188_s12 = scalar_lea.sflag [#allocation3], %s2187_s8 }
 0x1ba   : > { %p3664_p9 = pnand %p3667_p7, %p3920_p8 }
 0x1bc   : > { %3797 = dma.done.wait (!%p3664_p9), %s2188_s12, 2048  }
 0x1bd   : > { %3799 = vsyncadd (!%p3664_p9), %s2188_s12, 4294965248  ;;  %s17_s22 = sadd.s32 1, %s3830_s22   ;;  %s4954_s15 = smov %s3806_s16 }
 0x1be   : > { %p14_p10 = scmp.ge.s32.totalorder %s17_s22, 6   ;;  %s4955_s16 = smov %s3810_s17 }
 0x1bf   : > { %s4956_s17 = smov %s3929_s7  ;;  %s4957_s18 = smov %s3822_s20 }
 0x1c0   : > { %s4958_s19 = smov %s3826_s21  ;;  %s4959_s20 = smov %s4962_s25 }
 0x1c1   : > { %s4960_s21 = smov %s4966_s26  ;;  %16 = sbr.rel (!%p14_p10) target bundleno = 5 (0x5), region = 82 }
 0x1c8   :  { %2193 = vsyncpa [#allocation3], 1 }
 0x1c9   :  { %2195 = vsyncpa [#allocation3 + $0x1], 1 }

</bundles_post_ra>
